<compile_context>
chip_gen: v7x
topology: tpu7x:2x2x1
jax: 0.10.0
libtpu: 0.0.40
codegen_flags: <defaults>
</compile_context>

<pallas_src>
import jax
import jax.numpy as jnp
from jax import lax
from jax.experimental import pallas as pl
from jax.experimental.pallas import tpu as pltpu


# ------------------------------- kernel -------------------------------

def mcam_kernel(x_ref, xc_ref, w_theta_ref, w_pool_ref, w_W_ref, b_W_ref, out_ref):
    # x_ref:       (TB, 2C+1, TN)         rows [sar C | opt C | ones]                 (bf16)
    # xc_ref:      (TB, 4*(2C+2), 2*N4)   4 pool corners on sublanes, 2 modality lane
    #                                     groups with masked zeros                    (bf16)
    # w_theta_ref: (2IC, 2C+1)            block-diag theta weights + bias column      (bf16)
    # w_pool_ref:  (16IC, 4*(2C+2))       4x block-replica of [g_sar;g_opt;phi_sar;phi_opt]
    #                                     with per-modality bias columns              (bf16)
    # w_W_ref:     (C, IC)                final 1x1 conv, BN scale folded in          (bf16)
    # b_W_ref:     (C, 1)                 folded conv bias + BN shift                 (f32)
    # out_ref:     (TB, C, TN)                                                        (f32)
    tb = x_ref.shape[0]
    two_ic = w_theta_ref.shape[0]
    ic = two_ic // 2
    four_ic = w_pool_ref.shape[0] // 4
    two_n4 = xc_ref.shape[2]
    n4 = two_n4 // 2

    # weights are loop-invariant across the TB inner loop: load once per grid step
    w_theta = w_theta_ref[...]
    w_pool = w_pool_ref[...]
    w_W = w_W_ref[...]
    b_W = b_W_ref[...]

    def body(b, carry):
        x = x_ref[b]                                   # [2C+1, TN]      bf16
        xc = xc_ref[b]                                 # [4*(2C+2), 2N4] bf16

        # theta for both modalities in one push (biases folded via the ones row).
        theta_all = jnp.dot(w_theta, x,
                            preferred_element_type=jnp.float32)          # [2IC, TN] f32

        # g/phi for both modalities and all 4 pool corners in one push; the 2x2
        # max-pool is a max over four 8-row-aligned sublane blocks (pure VPU).
        proj = jnp.dot(w_pool, xc,
                       preferred_element_type=jnp.float32)               # [16IC, 2N4] f32
        pooled = jnp.maximum(
            jnp.maximum(proj[0:four_ic], proj[four_ic:2 * four_ic]),
            jnp.maximum(proj[2 * four_ic:3 * four_ic], proj[3 * four_ic:4 * four_ic]))

        g_bd = pooled[0:two_ic].astype(jnp.bfloat16)           # [2IC, 2N4] lane-grouped g
        phi_bd = pooled[two_ic:2 * two_ic].astype(jnp.bfloat16)  # [2IC, 2N4] block-diag phi
        theta_bf = theta_all.astype(jnp.bfloat16)

        # Fused f matmul: [f_x; f_y] stacked on sublanes in a single push.
        dn = (((0,), (0,)), ((), ()))
        f = lax.dot_general(phi_bd, theta_bf, dn,
                            preferred_element_type=jnp.float32)          # [2N4, TN] f32

        # Per-modality softmax over the pooled-position axis (8-aligned row blocks);
        # the two divides collapse into a single approx (EUP) reciprocal.
        m_x = jnp.max(f[0:n4], axis=0, keepdims=True)
        m_y = jnp.max(f[n4:two_n4], axis=0, keepdims=True)
        row = lax.broadcasted_iota(jnp.int32, f.shape, 0)
        e = jnp.exp(f - jnp.where(row < n4, m_x, m_y))                   # [e_x; e_y]
        denom = (jnp.sum(e[0:n4], axis=0, keepdims=True) *
                 jnp.sum(e[n4:two_n4], axis=0, keepdims=True))
        # [y; y] via one sublane roll (XLU slot): e_x*e_y in both row blocks.
        y2 = e * pltpu.roll(e, shift=n4, axis=0) * pl.reciprocal(denom, approx=True)

        # y_x^T and y_y^T in one push (g's masked lane groups select the right block).
        yxy = jnp.dot(g_bd, y2.astype(jnp.bfloat16),
                      preferred_element_type=jnp.float32)                # [2IC, TN]
        yc = (yxy[0:ic] * yxy[ic:two_ic]).astype(jnp.bfloat16)           # [IC, TN]

        # Final 1x1 conv with folded BatchNorm; lane-dense [C, TN] f32 store.
        out_ref[b] = jnp.dot(w_W, yc, preferred_element_type=jnp.float32) + b_W
        return carry

    lax.fori_loop(0, tb, body, 0, unroll=True)


# ------------------------------- wrapper -------------------------------

def mcam_pallas(x, xc, w_theta, w_pool, w_W, b_W, *, tb=None, tn=None):
    B, two_cp, N = x.shape
    C = b_W.shape[0]
    if tb is None:
        # Tiny B: fold the whole batch into one grid step to amortize the ~0.35us fixed
        # per-step overhead.  Larger B: keep tb=1 so the batch grid axis supplies steps
        # for pipelining and megacore (v7x 2-TC) sharding.
        tb = B if B <= 2 else 1
    if tn is None:
        # Tile the position axis so the [2*N4, TN] f32 softmax intermediates stay well
        # inside scoped VMEM (critical on v7x, 64 MiB physical).  For very large H*W,
        # shrink TN further (N4 itself is never tiled, so the softmax stays exact).
        tn = N if N <= 512 else 512
    assert B % tb == 0 and N % tn == 0
    assert tn == N or tn % 128 == 0   # lane-dense blocks when tiling
    grid = (B // tb, N // tn)
    return pl.pallas_call(
        mcam_kernel,
        out_shape=jax.ShapeDtypeStruct((B, C, N), jnp.float32),
        grid=grid,
        in_specs=[
            pl.BlockSpec((tb, two_cp, tn), lambda b, n: (b, 0, n)),
            pl.BlockSpec((tb, xc.shape[1], xc.shape[2]), lambda b, n: (b, 0, 0)),
            pl.BlockSpec(w_theta.shape, lambda b, n: (0, 0)),
            pl.BlockSpec(w_pool.shape, lambda b, n: (0, 0)),
            pl.BlockSpec(w_W.shape, lambda b, n: (0, 0)),
            pl.BlockSpec(b_W.shape, lambda b, n: (0, 0)),
        ],
        out_specs=pl.BlockSpec((tb, C, tn), lambda b, n: (b, 0, n)),
        compiler_params=pltpu.CompilerParams(
            dimension_semantics=("parallel", "parallel")),
    )(x, xc, w_theta, w_pool, w_W, b_W)


# ------------------------- host-side packing -------------------------

def pack_inputs(sar, opt, dtype=jnp.bfloat16):
    """x: [B, 2C+1, N]; xc: [B, 4*(2C+2), 2*N4] (corners on sublanes, modalities on
    two masked lane groups so phi/g come out of one matmul block-structured)."""
    B, C, H, W = sar.shape
    assert H % 2 == 0 and W % 2 == 0
    N = H * W
    n4 = N // 4

    ones = jnp.ones((B, 1, N), jnp.float32)
    x = jnp.concatenate([sar.reshape(B, C, N), opt.reshape(B, C, N), ones], axis=1)

    def corners(z):
        return (z[:, :, 0::2, 0::2].reshape(B, C, n4),
                z[:, :, 0::2, 1::2].reshape(B, C, n4),
                z[:, :, 1::2, 0::2].reshape(B, C, n4),
                z[:, :, 1::2, 1::2].reshape(B, C, n4))

    cs, co = corners(sar), corners(opt)
    zc = jnp.zeros((B, C, n4), jnp.float32)
    one1 = jnp.ones((B, 1, n4), jnp.float32)
    zero1 = jnp.zeros((B, 1, n4), jnp.float32)
    blocks = []
    for k in range(4):
        # per-corner rows: [sar C | opt C | sar-ones | opt-ones]
        # lanes: [sar positions (0:N4) | opt positions (N4:2N4)], off-modality zeroed.
        blocks += [jnp.concatenate([cs[k], zc], axis=2),
                   jnp.concatenate([zc, co[k]], axis=2),
                   jnp.concatenate([one1, zero1], axis=2),
                   jnp.concatenate([zero1, one1], axis=2)]
    xc = jnp.concatenate(blocks, axis=1)
    return x.astype(dtype), xc.astype(dtype)


def pack_params(p, C, IC, eps, dtype=jnp.bfloat16):
    ZC = jnp.zeros((IC, C), jnp.float32)
    z1 = jnp.zeros((IC, 1), jnp.float32)

    # theta: [2IC, 2C+1] block-diag + bias column (shared ones row).
    # NOTE: for large C the block-diagonal fusion doubles the MXU FLOPs of these
    # projections (half zeros); split back into per-modality matmuls in that regime.
    w_theta = jnp.concatenate([
        jnp.concatenate([p['w_theta_sar'].T, ZC, p['b_theta_sar'][:, None]], axis=1),
        jnp.concatenate([ZC, p['w_theta_opt'].T, p['b_theta_opt'][:, None]], axis=1),
    ], axis=0)

    # pool base: [4IC, 2C+2], columns [sar C | opt C | sar-ones | opt-ones].
    w_pool_base = jnp.concatenate([
        jnp.concatenate([p['w_g_sar'].T, ZC, p['b_g_sar'][:, None], z1], axis=1),
        jnp.concatenate([ZC, p['w_g_opt'].T, z1, p['b_g_opt'][:, None]], axis=1),
        jnp.concatenate([p['w_phi_sar'].T, ZC, p['b_phi_sar'][:, None], z1], axis=1),
        jnp.concatenate([ZC, p['w_phi_opt'].T, z1, p['b_phi_opt'][:, None]], axis=1),
    ], axis=0)
    # one replica per 2x2-pool corner (corners live on the sublane axis of xc).
    w_pool = jnp.kron(jnp.eye(4, dtype=jnp.float32), w_pool_base)      # [16IC, 4*(2C+2)]

    # final 1x1 conv with the inference BatchNorm affine folded in.
    bn_scale = p['bn_gamma'] / jnp.sqrt(p['bn_var'] + eps)
    w_W_fold = p['w_W'].T * bn_scale[:, None]                           # [C, IC]
    b_fold = (p['b_W'] * bn_scale + (p['bn_beta'] - p['bn_mean'] * bn_scale))[:, None]

    return (w_theta.astype(dtype), w_pool.astype(dtype),
            w_W_fold.astype(dtype), b_fold.astype(jnp.float32))


# ------------------- plain-JAX reference (mirrors PyTorch) -------------------

def ref_forward(sar, opt, p, eps=1e-5):
    def conv1x1(x, w, b):  # x NCHW, w [Cin, Cout]
        return jnp.einsum('bchw,co->bohw', x, w) + b[None, :, None, None]

    def maxpool2(x):
        B, O, H, W = x.shape
        return x.reshape(B, O, H // 2, 2, W // 2, 2).max(axis=(3, 5))

    B, C, H, W = sar.shape
    IC = p['w_g_sar'].shape[1]

    g_x = maxpool2(conv1x1(sar, p['w_g_sar'], p['b_g_sar'])).reshape(B, IC, -1).transpose(0, 2, 1)
    theta_x = conv1x1(sar, p['w_theta_sar'], p['b_theta_sar']).reshape(B, IC, -1).transpose(0, 2, 1)
    phi_x = maxpool2(conv1x1(sar, p['w_phi_sar'], p['b_phi_sar'])).reshape(B, IC, -1)
    f_div_C_x = jax.nn.softmax(jnp.einsum('bnc,bcm->bnm', theta_x, phi_x), axis=-1)

    g_y = maxpool2(conv1x1(opt, p['w_g_opt'], p['b_g_opt'])).reshape(B, IC, -1).transpose(0, 2, 1)
    theta_y = conv1x1(opt, p['w_theta_opt'], p['b_theta_opt']).reshape(B, IC, -1).transpose(0, 2, 1)
    phi_y = maxpool2(conv1x1(opt, p['w_phi_opt'], p['b_phi_opt'])).reshape(B, IC, -1)
    f_div_C_y = jax.nn.softmax(jnp.einsum('bnc,bcm->bnm', theta_y, phi_y), axis=-1)

    y = f_div_C_x * f_div_C_y
    y_x = jnp.einsum('bnm,bmc->bnc', y, g_x)
    y_y = jnp.einsum('bnm,bmc->bnc', y, g_y)
    yy = (y_x * y_y).transpose(0, 2, 1).reshape(B, IC, H, W)

    out = conv1x1(yy, p['w_W'], p['b_W'])
    out = (out - p['bn_mean'][None, :, None, None]) / jnp.sqrt(
        p['bn_var'][None, :, None, None] + eps)
    out = out * p['bn_gamma'][None, :, None, None] + p['bn_beta'][None, :, None, None]
    return out


# ------------------------------- main -------------------------------

if __name__ == "__main__":
    B, C, H, W = 2, 4, 16, 16
    IC = C // 2
    eps = 1e-5

    key = jax.random.PRNGKey(0)
    keys = jax.random.split(key, 24)
    sar = jax.random.normal(keys[0], (B, C, H, W), jnp.float32)
    opt = jax.random.normal(keys[1], (B, C, H, W), jnp.float32)

    def w_init(k, shape, scale=0.3):
        return scale * jax.random.normal(k, shape, jnp.float32)

    names = ['g_sar', 'g_opt', 'theta_sar', 'theta_opt', 'phi_sar', 'phi_opt']
    p = {}
    ki = 2
    for n in names:
        p[f'w_{n}'] = w_init(keys[ki], (C, IC)); ki += 1
        p[f'b_{n}'] = w_init(keys[ki], (IC,), 0.1); ki += 1
    p['w_W'] = w_init(keys[ki], (IC, C)); ki += 1
    p['b_W'] = w_init(keys[ki], (C,), 0.1); ki += 1
    p['bn_gamma'] = 1.0 + 0.1 * jax.random.normal(keys[ki], (C,), jnp.float32); ki += 1
    p['bn_beta'] = w_init(keys[ki], (C,), 0.1); ki += 1
    p['bn_mean'] = w_init(keys[ki], (C,), 0.1); ki += 1
    p['bn_var'] = 0.5 + jax.random.uniform(keys[ki], (C,), jnp.float32); ki += 1

    x_cn, xc_cn = pack_inputs(sar, opt)
    w_theta, w_pool, w_W_fold, b_fold = pack_params(p, C, IC, eps)

    out_cn = jax.jit(mcam_pallas)(x_cn, xc_cn, w_theta, w_pool, w_W_fold, b_fold)
    out_cn = jax.block_until_ready(out_cn)
    out_nchw = out_cn.reshape(B, C, H, W)   # kernel output is already channels-first

    ref = ref_forward(sar, opt, p, eps=eps)

    # bf16 MXU operands + approx reciprocal -> loosened tolerance
    # (f32 operands reproduce the reference to <1e-4).
    abs_err = float(jnp.max(jnp.abs(out_nchw - ref)))
    rel_fro = float(jnp.linalg.norm(out_nchw - ref) / jnp.linalg.norm(ref))
    assert rel_fro < 8e-2 and abs_err < 2.5e-1, (
        f"error too large: rel_fro={rel_fro:.4f} max_abs={abs_err:.4f}")
    print("KERNEL_OK")
</pallas_src>

<mosaic_0001>
module attributes {stable_mosaic.version = 11 : i64} {
  func.func @mcam_kernel(%arg0: i32, %arg1: i32, %arg2: memref<2x9x256xbf16, #tpu.memory_space<vmem>>, %arg3: memref<2x40x128xbf16, #tpu.memory_space<vmem>>, %arg4: memref<4x9xbf16, #tpu.memory_space<vmem>>, %arg5: memref<32x40xbf16, #tpu.memory_space<vmem>>, %arg6: memref<4x2xbf16, #tpu.memory_space<vmem>>, %arg7: memref<4x1xf32, #tpu.memory_space<vmem>>, %arg8: memref<2x4x256xf32, #tpu.memory_space<vmem>>) attributes {dimension_semantics = [#tpu.dimension_semantics<parallel>, #tpu.dimension_semantics<parallel>], iteration_bounds = array<i64: 1, 1>, scalar_prefetch = 0 : i64, scratch_operands = 0 : i64, tpu.core_type = #tpu.core_type<tc>, window_params = [{transform_indices = @transform_0, window_bounds = array<i64: 2, 9, 256>}, {transform_indices = @transform_1, window_bounds = array<i64: 2, 40, 128>}, {pipeline_mode = #tpu.pipeline_mode<synchronous>, transform_indices = @transform_2, window_bounds = array<i64: 4, 9>}, {pipeline_mode = #tpu.pipeline_mode<synchronous>, transform_indices = @transform_3, window_bounds = array<i64: 32, 40>}, {pipeline_mode = #tpu.pipeline_mode<synchronous>, transform_indices = @transform_4, window_bounds = array<i64: 4, 2>}, {pipeline_mode = #tpu.pipeline_mode<synchronous>, transform_indices = @transform_5, window_bounds = array<i64: 4, 1>}, {transform_indices = @transform_6, window_bounds = array<i64: 2, 4, 256>}]} {
    %c0 = arith.constant 0 : index
    %c0_0 = arith.constant 0 : index
    %0 = vector.load %arg4[%c0, %c0_0] : memref<4x9xbf16, #tpu.memory_space<vmem>>, vector<4x9xbf16>
    %c0_1 = arith.constant 0 : index
    %c0_2 = arith.constant 0 : index
    %1 = vector.load %arg5[%c0_1, %c0_2] : memref<32x40xbf16, #tpu.memory_space<vmem>>, vector<32x40xbf16>
    %c0_3 = arith.constant 0 : index
    %c0_4 = arith.constant 0 : index
    %2 = vector.load %arg6[%c0_3, %c0_4] : memref<4x2xbf16, #tpu.memory_space<vmem>>, vector<4x2xbf16>
    %c0_5 = arith.constant 0 : index
    %c0_6 = arith.constant 0 : index
    %3 = vector.load %arg7[%c0_5, %c0_6] : memref<4x1xf32, #tpu.memory_space<vmem>>, vector<4x1xf32>
    %c0_i32 = arith.constant 0 : i32
    %4 = arith.index_cast %c0_i32 : i32 to index
    %c0_7 = arith.constant 0 : index
    %c0_8 = arith.constant 0 : index
    %5 = vector.load %arg2[%4, %c0_7, %c0_8] : memref<2x9x256xbf16, #tpu.memory_space<vmem>>, vector<1x9x256xbf16>
    %6 = vector.shape_cast %5 : vector<1x9x256xbf16> to vector<9x256xbf16>
    %7 = arith.index_cast %c0_i32 : i32 to index
    %c0_9 = arith.constant 0 : index
    %c0_10 = arith.constant 0 : index
    %8 = vector.load %arg3[%7, %c0_9, %c0_10] : memref<2x40x128xbf16, #tpu.memory_space<vmem>>, vector<1x40x128xbf16>
    %9 = vector.shape_cast %8 : vector<1x40x128xbf16> to vector<40x128xbf16>
    %cst = arith.constant dense<0.000000e+00> : vector<4x256xf32>
    %10 = tpu.matmul %0, %6, %cst {dimension_numbers = #tpu.dot_dimension_numbers<[1], [0], [0], [1], [0, 0, 1, 1], [], []>} : vector<4x9xbf16>, vector<9x256xbf16>, vector<4x256xf32> -> vector<4x256xf32>
    %cst_11 = arith.constant dense<0.000000e+00> : vector<32x128xf32>
    %11 = tpu.matmul %1, %9, %cst_11 {dimension_numbers = #tpu.dot_dimension_numbers<[1], [0], [0], [1], [0, 0, 1, 1], [], []>} : vector<32x40xbf16>, vector<40x128xbf16>, vector<32x128xf32> -> vector<32x128xf32>
    %12 = vector.extract_strided_slice %11 {offsets = [0, 0], sizes = [8, 128], strides = [1, 1]} : vector<32x128xf32> to vector<8x128xf32>
    %13 = vector.extract_strided_slice %11 {offsets = [8, 0], sizes = [8, 128], strides = [1, 1]} : vector<32x128xf32> to vector<8x128xf32>
    %14 = arith.maximumf %12, %13 : vector<8x128xf32>
    %15 = vector.extract_strided_slice %11 {offsets = [16, 0], sizes = [8, 128], strides = [1, 1]} : vector<32x128xf32> to vector<8x128xf32>
    %16 = vector.extract_strided_slice %11 {offsets = [24, 0], sizes = [8, 128], strides = [1, 1]} : vector<32x128xf32> to vector<8x128xf32>
    %17 = arith.maximumf %15, %16 : vector<8x128xf32>
    %18 = arith.maximumf %14, %17 : vector<8x128xf32>
    %19 = vector.extract_strided_slice %18 {offsets = [0, 0], sizes = [4, 128], strides = [1, 1]} : vector<8x128xf32> to vector<4x128xf32>
    %20 = arith.truncf %19 : vector<4x128xf32> to vector<4x128xbf16>
    %21 = vector.extract_strided_slice %18 {offsets = [4, 0], sizes = [4, 128], strides = [1, 1]} : vector<8x128xf32> to vector<4x128xf32>
    %22 = arith.truncf %21 : vector<4x128xf32> to vector<4x128xbf16>
    %23 = arith.truncf %10 : vector<4x256xf32> to vector<4x256xbf16>
    %cst_12 = arith.constant dense<0.000000e+00> : vector<128x256xf32>
    %24 = tpu.matmul %22, %23, %cst_12 {dimension_numbers = #tpu.dot_dimension_numbers<[0], [0], [1], [1], [0, 1, 1, 1], [], []>} : vector<4x128xbf16>, vector<4x256xbf16>, vector<128x256xf32> -> vector<128x256xf32>
    %25 = vector.extract_strided_slice %24 {offsets = [0, 0], sizes = [64, 256], strides = [1, 1]} : vector<128x256xf32> to vector<64x256xf32>
    %cst_13 = arith.constant dense<0xFF800000> : vector<256xf32>
    %26 = vector.multi_reduction <maximumf>, %25, %cst_13 [0] : vector<64x256xf32> to vector<256xf32>
    %27 = vector.shape_cast %26 : vector<256xf32> to vector<1x256xf32>
    %28 = vector.extract_strided_slice %24 {offsets = [64, 0], sizes = [64, 256], strides = [1, 1]} : vector<128x256xf32> to vector<64x256xf32>
    %cst_14 = arith.constant dense<0xFF800000> : vector<256xf32>
    %29 = vector.multi_reduction <maximumf>, %28, %cst_14 [0] : vector<64x256xf32> to vector<256xf32>
    %30 = vector.shape_cast %29 : vector<256xf32> to vector<1x256xf32>
    %31 = tpu.iota {dimensions = array<i32: 0>} : vector<128x256xi32>
    %c64_i32 = arith.constant 64 : i32
    %32 = vector.broadcast %c64_i32 : i32 to vector<128x256xi32>
    %33 = arith.cmpi slt, %31, %32 : vector<128x256xi32>
    %34 = vector.shape_cast %27 : vector<1x256xf32> to vector<1x256xf32>
    %35 = vector.broadcast %34 : vector<1x256xf32> to vector<128x256xf32>
    %36 = vector.shape_cast %30 : vector<1x256xf32> to vector<1x256xf32>
    %37 = vector.broadcast %36 : vector<1x256xf32> to vector<128x256xf32>
    %38 = arith.select %33, %35, %37 : vector<128x256xi1>, vector<128x256xf32>
    %39 = arith.subf %24, %38 : vector<128x256xf32>
    %40 = math.exp %39 : vector<128x256xf32>
    %41 = vector.extract_strided_slice %40 {offsets = [0, 0], sizes = [64, 256], strides = [1, 1]} : vector<128x256xf32> to vector<64x256xf32>
    %cst_15 = arith.constant dense<0.000000e+00> : vector<256xf32>
    %42 = vector.multi_reduction <add>, %41, %cst_15 [0] : vector<64x256xf32> to vector<256xf32>
    %43 = vector.shape_cast %42 : vector<256xf32> to vector<1x256xf32>
    %44 = vector.extract_strided_slice %40 {offsets = [64, 0], sizes = [64, 256], strides = [1, 1]} : vector<128x256xf32> to vector<64x256xf32>
    %cst_16 = arith.constant dense<0.000000e+00> : vector<256xf32>
    %45 = vector.multi_reduction <add>, %44, %cst_16 [0] : vector<64x256xf32> to vector<256xf32>
    %46 = vector.shape_cast %45 : vector<256xf32> to vector<1x256xf32>
    %47 = arith.mulf %43, %46 : vector<1x256xf32>
    %c64_i32_17 = arith.constant 64 : i32
    %48 = tpu.dynamic_rotate %40 by %c64_i32_17 dim 0 : vector<128x256xf32>, i32 -> vector<128x256xf32>
    %49 = arith.mulf %40, %48 : vector<128x256xf32>
    %50 = tpu.reciprocal %47 {approx = true} : vector<1x256xf32> -> vector<1x256xf32>
    %51 = vector.broadcast %50 : vector<1x256xf32> to vector<128x256xf32>
    %52 = arith.mulf %49, %51 : vector<128x256xf32>
    %53 = arith.truncf %52 : vector<128x256xf32> to vector<128x256xbf16>
    %cst_18 = arith.constant dense<0.000000e+00> : vector<4x256xf32>
    %54 = tpu.matmul %20, %53, %cst_18 {dimension_numbers = #tpu.dot_dimension_numbers<[1], [0], [0], [1], [0, 0, 1, 1], [], []>} : vector<4x128xbf16>, vector<128x256xbf16>, vector<4x256xf32> -> vector<4x256xf32>
    %55 = vector.extract_strided_slice %54 {offsets = [0, 0], sizes = [2, 256], strides = [1, 1]} : vector<4x256xf32> to vector<2x256xf32>
    %56 = vector.extract_strided_slice %54 {offsets = [2, 0], sizes = [2, 256], strides = [1, 1]} : vector<4x256xf32> to vector<2x256xf32>
    %57 = arith.mulf %55, %56 : vector<2x256xf32>
    %58 = arith.truncf %57 : vector<2x256xf32> to vector<2x256xbf16>
    %cst_19 = arith.constant dense<0.000000e+00> : vector<4x256xf32>
    %59 = tpu.matmul %2, %58, %cst_19 {dimension_numbers = #tpu.dot_dimension_numbers<[1], [0], [0], [1], [0, 0, 1, 1], [], []>} : vector<4x2xbf16>, vector<2x256xbf16>, vector<4x256xf32> -> vector<4x256xf32>
    %60 = vector.broadcast %3 : vector<4x1xf32> to vector<4x256xf32>
    %61 = arith.addf %59, %60 : vector<4x256xf32>
    %62 = arith.index_cast %c0_i32 : i32 to index
    %c0_20 = arith.constant 0 : index
    %c0_21 = arith.constant 0 : index
    %63 = vector.load %arg8[%62, %c0_20, %c0_21] : memref<2x4x256xf32, #tpu.memory_space<vmem>>, vector<1x4x256xf32>
    %64 = vector.shape_cast %63 : vector<1x4x256xf32> to vector<4x256xf32>
    %65 = vector.shape_cast %61 : vector<4x256xf32> to vector<1x4x256xf32>
    tpu.vector_store %arg8[%62, %c0_20, %c0_21], %65 {strides = array<i32>} : memref<2x4x256xf32, #tpu.memory_space<vmem>>, vector<1x4x256xf32>,
    %c1_i32 = arith.constant 1 : i32
    %66 = arith.index_cast %c1_i32 : i32 to index
    %c0_22 = arith.constant 0 : index
    %c0_23 = arith.constant 0 : index
    %67 = vector.load %arg2[%66, %c0_22, %c0_23] : memref<2x9x256xbf16, #tpu.memory_space<vmem>>, vector<1x9x256xbf16>
    %68 = vector.shape_cast %67 : vector<1x9x256xbf16> to vector<9x256xbf16>
    %69 = arith.index_cast %c1_i32 : i32 to index
    %c0_24 = arith.constant 0 : index
    %c0_25 = arith.constant 0 : index
    %70 = vector.load %arg3[%69, %c0_24, %c0_25] : memref<2x40x128xbf16, #tpu.memory_space<vmem>>, vector<1x40x128xbf16>
    %71 = vector.shape_cast %70 : vector<1x40x128xbf16> to vector<40x128xbf16>
    %cst_26 = arith.constant dense<0.000000e+00> : vector<4x256xf32>
    %72 = tpu.matmul %0, %68, %cst_26 {dimension_numbers = #tpu.dot_dimension_numbers<[1], [0], [0], [1], [0, 0, 1, 1], [], []>} : vector<4x9xbf16>, vector<9x256xbf16>, vector<4x256xf32> -> vector<4x256xf32>
    %cst_27 = arith.constant dense<0.000000e+00> : vector<32x128xf32>
    %73 = tpu.matmul %1, %71, %cst_27 {dimension_numbers = #tpu.dot_dimension_numbers<[1], [0], [0], [1], [0, 0, 1, 1], [], []>} : vector<32x40xbf16>, vector<40x128xbf16>, vector<32x128xf32> -> vector<32x128xf32>
    %74 = vector.extract_strided_slice %73 {offsets = [0, 0], sizes = [8, 128], strides = [1, 1]} : vector<32x128xf32> to vector<8x128xf32>
    %75 = vector.extract_strided_slice %73 {offsets = [8, 0], sizes = [8, 128], strides = [1, 1]} : vector<32x128xf32> to vector<8x128xf32>
    %76 = arith.maximumf %74, %75 : vector<8x128xf32>
    %77 = vector.extract_strided_slice %73 {offsets = [16, 0], sizes = [8, 128], strides = [1, 1]} : vector<32x128xf32> to vector<8x128xf32>
    %78 = vector.extract_strided_slice %73 {offsets = [24, 0], sizes = [8, 128], strides = [1, 1]} : vector<32x128xf32> to vector<8x128xf32>
    %79 = arith.maximumf %77, %78 : vector<8x128xf32>
    %80 = arith.maximumf %76, %79 : vector<8x128xf32>
    %81 = vector.extract_strided_slice %80 {offsets = [0, 0], sizes = [4, 128], strides = [1, 1]} : vector<8x128xf32> to vector<4x128xf32>
    %82 = arith.truncf %81 : vector<4x128xf32> to vector<4x128xbf16>
    %83 = vector.extract_strided_slice %80 {offsets = [4, 0], sizes = [4, 128], strides = [1, 1]} : vector<8x128xf32> to vector<4x128xf32>
    %84 = arith.truncf %83 : vector<4x128xf32> to vector<4x128xbf16>
    %85 = arith.truncf %72 : vector<4x256xf32> to vector<4x256xbf16>
    %cst_28 = arith.constant dense<0.000000e+00> : vector<128x256xf32>
    %86 = tpu.matmul %84, %85, %cst_28 {dimension_numbers = #tpu.dot_dimension_numbers<[0], [0], [1], [1], [0, 1, 1, 1], [], []>} : vector<4x128xbf16>, vector<4x256xbf16>, vector<128x256xf32> -> vector<128x256xf32>
    %87 = vector.extract_strided_slice %86 {offsets = [0, 0], sizes = [64, 256], strides = [1, 1]} : vector<128x256xf32> to vector<64x256xf32>
    %cst_29 = arith.constant dense<0xFF800000> : vector<256xf32>
    %88 = vector.multi_reduction <maximumf>, %87, %cst_29 [0] : vector<64x256xf32> to vector<256xf32>
    %89 = vector.shape_cast %88 : vector<256xf32> to vector<1x256xf32>
    %90 = vector.extract_strided_slice %86 {offsets = [64, 0], sizes = [64, 256], strides = [1, 1]} : vector<128x256xf32> to vector<64x256xf32>
    %cst_30 = arith.constant dense<0xFF800000> : vector<256xf32>
    %91 = vector.multi_reduction <maximumf>, %90, %cst_30 [0] : vector<64x256xf32> to vector<256xf32>
    %92 = vector.shape_cast %91 : vector<256xf32> to vector<1x256xf32>
    %93 = tpu.iota {dimensions = array<i32: 0>} : vector<128x256xi32>
    %c64_i32_31 = arith.constant 64 : i32
    %94 = vector.broadcast %c64_i32_31 : i32 to vector<128x256xi32>
    %95 = arith.cmpi slt, %93, %94 : vector<128x256xi32>
    %96 = vector.shape_cast %89 : vector<1x256xf32> to vector<1x256xf32>
    %97 = vector.broadcast %96 : vector<1x256xf32> to vector<128x256xf32>
    %98 = vector.shape_cast %92 : vector<1x256xf32> to vector<1x256xf32>
    %99 = vector.broadcast %98 : vector<1x256xf32> to vector<128x256xf32>
    %100 = arith.select %95, %97, %99 : vector<128x256xi1>, vector<128x256xf32>
    %101 = arith.subf %86, %100 : vector<128x256xf32>
    %102 = math.exp %101 : vector<128x256xf32>
    %103 = vector.extract_strided_slice %102 {offsets = [0, 0], sizes = [64, 256], strides = [1, 1]} : vector<128x256xf32> to vector<64x256xf32>
    %cst_32 = arith.constant dense<0.000000e+00> : vector<256xf32>
    %104 = vector.multi_reduction <add>, %103, %cst_32 [0] : vector<64x256xf32> to vector<256xf32>
    %105 = vector.shape_cast %104 : vector<256xf32> to vector<1x256xf32>
    %106 = vector.extract_strided_slice %102 {offsets = [64, 0], sizes = [64, 256], strides = [1, 1]} : vector<128x256xf32> to vector<64x256xf32>
    %cst_33 = arith.constant dense<0.000000e+00> : vector<256xf32>
    %107 = vector.multi_reduction <add>, %106, %cst_33 [0] : vector<64x256xf32> to vector<256xf32>
    %108 = vector.shape_cast %107 : vector<256xf32> to vector<1x256xf32>
    %109 = arith.mulf %105, %108 : vector<1x256xf32>
    %c64_i32_34 = arith.constant 64 : i32
    %110 = tpu.dynamic_rotate %102 by %c64_i32_34 dim 0 : vector<128x256xf32>, i32 -> vector<128x256xf32>
    %111 = arith.mulf %102, %110 : vector<128x256xf32>
    %112 = tpu.reciprocal %109 {approx = true} : vector<1x256xf32> -> vector<1x256xf32>
    %113 = vector.broadcast %112 : vector<1x256xf32> to vector<128x256xf32>
    %114 = arith.mulf %111, %113 : vector<128x256xf32>
    %115 = arith.truncf %114 : vector<128x256xf32> to vector<128x256xbf16>
    %cst_35 = arith.constant dense<0.000000e+00> : vector<4x256xf32>
    %116 = tpu.matmul %82, %115, %cst_35 {dimension_numbers = #tpu.dot_dimension_numbers<[1], [0], [0], [1], [0, 0, 1, 1], [], []>} : vector<4x128xbf16>, vector<128x256xbf16>, vector<4x256xf32> -> vector<4x256xf32>
    %117 = vector.extract_strided_slice %116 {offsets = [0, 0], sizes = [2, 256], strides = [1, 1]} : vector<4x256xf32> to vector<2x256xf32>
    %118 = vector.extract_strided_slice %116 {offsets = [2, 0], sizes = [2, 256], strides = [1, 1]} : vector<4x256xf32> to vector<2x256xf32>
    %119 = arith.mulf %117, %118 : vector<2x256xf32>
    %120 = arith.truncf %119 : vector<2x256xf32> to vector<2x256xbf16>
    %cst_36 = arith.constant dense<0.000000e+00> : vector<4x256xf32>
    %121 = tpu.matmul %2, %120, %cst_36 {dimension_numbers = #tpu.dot_dimension_numbers<[1], [0], [0], [1], [0, 0, 1, 1], [], []>} : vector<4x2xbf16>, vector<2x256xbf16>, vector<4x256xf32> -> vector<4x256xf32>
    %122 = vector.broadcast %3 : vector<4x1xf32> to vector<4x256xf32>
    %123 = arith.addf %121, %122 : vector<4x256xf32>
    %124 = arith.index_cast %c1_i32 : i32 to index
    %c0_37 = arith.constant 0 : index
    %c0_38 = arith.constant 0 : index
    %125 = vector.load %arg8[%124, %c0_37, %c0_38] : memref<2x4x256xf32, #tpu.memory_space<vmem>>, vector<1x4x256xf32>
    %126 = vector.shape_cast %125 : vector<1x4x256xf32> to vector<4x256xf32>
    %127 = vector.shape_cast %123 : vector<4x256xf32> to vector<1x4x256xf32>
    tpu.vector_store %arg8[%124, %c0_37, %c0_38], %127 {strides = array<i32>} : memref<2x4x256xf32, #tpu.memory_space<vmem>>, vector<1x4x256xf32>,
    %c2_i32 = arith.constant 2 : i32
    return
  }
  func.func @transform_0(%arg0: i32, %arg1: i32) -> (i32, i32, i32) {
    %c0_i32 = arith.constant 0 : i32
    %c0_i32_0 = arith.constant 0 : i32
    return %arg0, %c0_i32, %arg1 : i32, i32, i32
  }
  func.func @transform_1(%arg0: i32, %arg1: i32) -> (i32, i32, i32) {
    %c0_i32 = arith.constant 0 : i32
    %c0_i32_0 = arith.constant 0 : i32
    %c0_i32_1 = arith.constant 0 : i32
    return %arg0, %c0_i32, %c0_i32_0 : i32, i32, i32
  }
  func.func @transform_2(%arg0: i32, %arg1: i32) -> (i32, i32) {
    %c0_i32 = arith.constant 0 : i32
    %c0_i32_0 = arith.constant 0 : i32
    %c0_i32_1 = arith.constant 0 : i32
    return %c0_i32, %c0_i32_0 : i32, i32
  }
  func.func @transform_3(%arg0: i32, %arg1: i32) -> (i32, i32) {
    %c0_i32 = arith.constant 0 : i32
    %c0_i32_0 = arith.constant 0 : i32
    %c0_i32_1 = arith.constant 0 : i32
    return %c0_i32, %c0_i32_0 : i32, i32
  }
  func.func @transform_4(%arg0: i32, %arg1: i32) -> (i32, i32) {
    %c0_i32 = arith.constant 0 : i32
    %c0_i32_0 = arith.constant 0 : i32
    %c0_i32_1 = arith.constant 0 : i32
    return %c0_i32, %c0_i32_0 : i32, i32
  }
  func.func @transform_5(%arg0: i32, %arg1: i32) -> (i32, i32) {
    %c0_i32 = arith.constant 0 : i32
    %c0_i32_0 = arith.constant 0 : i32
    %c0_i32_1 = arith.constant 0 : i32
    return %c0_i32, %c0_i32_0 : i32, i32
  }
  func.func @transform_6(%arg0: i32, %arg1: i32) -> (i32, i32, i32) {
    %c0_i32 = arith.constant 0 : i32
    %c0_i32_0 = arith.constant 0 : i32
    return %arg0, %c0_i32, %arg1 : i32, i32, i32
  }
}

</mosaic_0001>

<bundles_post_ra>
// kernel: mcam_pallas.1
= control target key start
LH: loop header
LB: loop body
LE: loop exit
PB: predicated region body
PF: predicated region fallthrough
CT: control target
= control target key end

     0   :  { %vm51_vm0 = vcmask 1043456   ;;  %vm52_vm1 = vcmask 1044480   ;;  %v1733_v2 = vmov 65535   ;;  %v1734_v5 = vmov 0   ;;  %s2347_s0 = inlined_call_operand.vmem [shape: bf16[2,9,256], index: 0, kind: input, shape index: {}]   ;;  %s2348_s1 = inlined_call_operand.vmem [shape: bf16[2,40,128], index: 1, kind: input, shape index: {}]   ;;  %s2349_s2 = inlined_call_operand.vmem [shape: bf16[4,9], index: 2, kind: input, shape index: {}]   ;;  %s2350_s3 = inlined_call_operand.vmem [shape: bf16[32,40], index: 3, kind: input, shape index: {}]   ;;  %s2351_s4 = inlined_call_operand.vmem [shape: bf16[4,2], index: 4, kind: input, shape index: {}]   ;;  %s2352_s5 = inlined_call_operand.vmem [shape: f32[4,1], index: 5, kind: input, shape index: {}]   ;;  %s2353_s6 = inlined_call_operand.hbm [shape: f32[2,4,256], index: 6, kind: output, shape index: {}]  }
   0x1   :  { %v1559_v0 = vld [vmem:[%s2347_s0 + $0x4] ss:$8 sps:$4 sm:$0x1f]   ;;  %v1561_v1 = vld [vmem:[%s2347_s0] ss:$8 sps:$4 sm:$0x1f]   ;;  %93 = vmatprep.mubr.bf16.mxu1 %v1734_v5  ;;  %275 = vmatprep.mubr.bf16.mxu0 %v1734_v5 }
   0x2   :  { %v53_v3 = vsel %vm51_vm0, 4294967295, %v1733_v2  ;;  %v1562_v6 = vld [vmem:[%s2348_s1] sm:$0xff]   ;;  %1557 = vset.pattern.permute.xlu1 %v1734_v5  ;;  %v1563_v10 = vld [vmem:[%s2348_s1 + $0x8] sm:$0xff]   ;;  %vm47_vm2 = vcmask 72704   ;;  %vm127_vm3 = vcmask 326656  }
   0x3   :  { %v1780_v4 = vsel %vm52_vm1, %v53_v3, 0  ;;  %v1793_v9 = vld [vmem:[%s2349_s2] sm:$0x3] }
   0x4   :  { %v59_v7 = vand.u32 %v1559_v0, %v1780_v4  ;;  %v56_v8 = vand.u32 %v1561_v1, %v1780_v4  ;;  %v1801_v11 = vld [vmem:[%s2350_s3] sm:$0xff]  }
   0x6   :  { %61 = vmatprep.subr.bf16.mxu1 %v59_v7 }
   0x7   :  { %62 = vmatpush1.bf16.msra.mxu1 %v56_v8 }
   0x8   :  { %1530 = vmatprep.subr.bf16.mxu1 %v1562_v6 }
   0x9   :  { %11 = vsyncpa [#allocation3], 0  ;;  %v1564_v12 = vld [vmem:[%s2348_s1 + $0x10] ss:$0 sps:$4 sm:$0xff]   ;;  %v1815_v14 = vld [vmem:[%s2350_s3 + $0x8] sm:$0xff]   ;;  %vm236_vm4 = vcmask 1041408  }
   0xa   :  { %1475 = vmatmul.mubr.msk.bf16.vlgmr.msra.gmra.mrb[0].mxu1 %vm47_vm2, %v1793_v9  ;;  %v135_v13 = vsel %vm51_vm0, %v1564_v12, 0  ;;  %vm211_vm5 = vcmask 31744   ;;  %vm725_vm6 = vcmask 1040384   ;;  %vm721_vm7 = vcmask 15360  }
   0xb   :  { %1531 = vmatpush3.bf16.msra.mxu1 %v1562_v6  ;;  %1536 = vmatprep.mubr.msk.bf16.mxu1 %vm127_vm3, %v1801_v11 }
   0xc   :  { %1532 = vmatprep.subr.bf16.mxu1 %v1563_v10 }
   0xf   :  { %1533 = vmatpush3.bf16.msra.mxu1 %v1563_v10 }
  0x10   :  { %1550 = vmatprep.subr.msk.bf16.mxu1 %vm51_vm0, %v1564_v12 }
  0x13   :  { %1535 = vmatpush3.bf16.msra.mxu1 %v135_v13 }
  0x16   :  { %1537 = vmatmul.mubr.msk.bf16.vlgmr.msra.gmra.mrb[4].mxu1 %vm127_vm3, %v1815_v14 }
  0x17   :  { %697 = vmatprep.mubr.bf16.mxu1 %v1734_v5 }
  0xdd   :  { %v95_v15 = vpop.f32.mrb[0].mxu1 }
  0xde   :  { %v190_v16 = vpack.c.bf16 %v95_v15, %v95_v15  ;;  %v97_v17 = vpop.f32.mrb[1].mxu1 }
  0xdf   :  { %v191_v18 = vpack.c.bf16 %v97_v17, %v97_v17  ;;  %v99_v19 = vpop.f32.mrb[2].mxu1 }
  0xe0   :  { %v100_v20 = vpop.f32.mrb[3].mxu1  ;;  %v238_v21 = vsel %vm236_vm4, %v190_v16, 0 }
  0xe1   :  { %1483 = vmatprep.subr.msk.bf16.mxu0 %vm236_vm4, %v191_v18 }
  0xe2   :  { %244 = vmatpush1.bf16.msra.mxu0 %v238_v21 }
  0xe9   :  { %v1538_v22 = vpop.f32.mrb[4].mxu1 }
  0xea   :  { %v171_v23 = vpop.f32.mrb[5].mxu1 }
  0xeb   :  { %v1539_v24 = vpop.f32.mrb[6].mxu1 }
  0xec   :  { %v187_v25 = vmax.f32 %v1538_v22, %v1539_v24  ;;  %v174_v26 = vpop.f32.mrb[7].mxu1 }
  0xed   :  { %v186_v27 = vmax.f32 %v171_v23, %v174_v26 }
  0xef   :  { %v188_v28 = vmax.f32 %v186_v27, %v187_v25 }
  0xf1   :  { %v1822_v29 = vpack.c.bf16 %v188_v28, %v188_v28 }
  0xf3   :  { %v193_v30 = vrot.slane %v1822_v29, 2 }
  0xf5   :  { %195 = vxpose.xlu0.c.b16.start.end [1/1] (short) %v193_v30, 128 }
 0x15b   :  { %v203_v31 = vpop.trf.xlu0 }
 0x15c   :  { %1484 = vmatmul.mubr.msk.bf16.vlgmr.msra.gmra.mrb[0].mxu0 %vm211_vm5, %v203_v31 }
 0x15d   :  { %285 = vmatprep.mubr.bf16.mxu0 %v1734_v5 }
 0x15f   :  { %v204_v32 = vpop.trf.xlu0 }
 0x163   :  { %v205_v33 = vpop.trf.xlu0 }
 0x164   :  { %1485 = vmatmul.mubr.msk.bf16.gmra.mrb[4].mxu0 %vm211_vm5, %v204_v32 }
 0x165   :  { %295 = vmatprep.mubr.bf16.mxu0 %v1734_v5 }
 0x167   :  { %v206_v34 = vpop.trf.xlu0 }
 0x16b   :  { %v207_v35 = vpop.trf.xlu0 }
 0x16c   :  { %1486 = vmatmul.mubr.msk.bf16.gmra.mrb[8].mxu0 %vm211_vm5, %v205_v33 }
 0x16d   :  { %305 = vmatprep.mubr.bf16.mxu0 %v1734_v5 }
 0x16f   :  { %v208_v36 = vpop.trf.xlu0 }
 0x173   :  { %v209_v37 = vpop.trf.xlu0 }
 0x174   :  { %1487 = vmatmul.mubr.msk.bf16.gmra.mrb[12].mxu0 %vm211_vm5, %v206_v34 }
 0x175   :  { %315 = vmatprep.mubr.bf16.mxu0 %v1734_v5 }
 0x177   :  { %v210_v38 = vpop.trf.xlu0 }
 0x17c   :  { %1488 = vmatmul.mubr.msk.bf16.gmra.mrb[16].mxu0 %vm211_vm5, %v207_v35 }
 0x17d   :  { %325 = vmatprep.mubr.bf16.mxu0 %v1734_v5 }
 0x184   :  { %1489 = vmatmul.mubr.msk.bf16.gmra.mrb[20].mxu0 %vm211_vm5, %v208_v36 }
 0x185   :  { %335 = vmatprep.mubr.bf16.mxu0 %v1734_v5 }
 0x18c   :  { %1490 = vmatmul.mubr.msk.bf16.gmra.mrb[24].mxu0 %vm211_vm5, %v209_v37 }
 0x18d   :  { %345 = vmatprep.mubr.bf16.mxu0 %v1734_v5 }
 0x194   :  { %1491 = vmatmul.mubr.msk.bf16.gmra.mrb[28].mxu0 %vm211_vm5, %v210_v38 }
 0x195   :  { %996 = vmatprep.mubr.bf16.mxu0 %v1734_v5 }
 0x22f   :  { %v277_v39 = vpop.f32.mrb[0].mxu0 }
 0x230   :  { %v1841_v40 = vpop.f32.mrb[1].mxu0 }
 0x231   :  { %v281_v41 = vpop.f32.mrb[2].mxu0 }
 0x232   :  { %v1843_v42 = vpop.f32.mrb[3].mxu0 }
 0x237   :  { %v287_v43 = vpop.f32.mrb[4].mxu0 }
 0x238   :  { %v356_v44 = vmax.f32 %v277_v39, %v287_v43  ;;  %v1845_v45 = vpop.f32.mrb[5].mxu0 }
 0x239   :  { %v369_v46 = vmax.f32 %v1841_v40, %v1845_v45  ;;  %v291_v47 = vpop.f32.mrb[6].mxu0 }
 0x23a   :  { %v357_v48 = vmax.f32 %v281_v41, %v291_v47  ;;  %v1849_v49 = vpop.f32.mrb[7].mxu0 }
 0x23b   :  { %v370_v50 = vmax.f32 %v1843_v42, %v1849_v49 }
 0x23f   :  { %v297_v51 = vpop.f32.mrb[8].mxu0 }
 0x240   :  { %v358_v52 = vmax.f32 %v356_v44, %v297_v51  ;;  %v1853_v53 = vpop.f32.mrb[9].mxu0 }
 0x241   :  { %v371_v54 = vmax.f32 %v369_v46, %v1853_v53  ;;  %v301_v55 = vpop.f32.mrb[10].mxu0 }
 0x242   :  { %v359_v56 = vmax.f32 %v357_v48, %v301_v55  ;;  %v1856_v57 = vpop.f32.mrb[11].mxu0 }
 0x243   :  { %v372_v58 = vmax.f32 %v370_v50, %v1856_v57 }
 0x247   :  { %v1859_v59 = vpop.f32.mrb[12].mxu0 }
 0x248   :  { %v360_v60 = vmax.f32 %v358_v52, %v1859_v59  ;;  %v1862_v61 = vpop.f32.mrb[13].mxu0 }
 0x249   :  { %v373_v62 = vmax.f32 %v371_v54, %v1862_v61  ;;  %v1865_v63 = vpop.f32.mrb[14].mxu0 }
 0x24a   :  { %v361_v0 = vmax.f32 %v359_v56, %v1865_v63  ;;  %v1868_v1 = vpop.f32.mrb[15].mxu0 }
 0x24b   :  { %v374_v2 = vmax.f32 %v372_v58, %v1868_v1 }
 0x24c   :  { %v362_v3 = vmax.f32 %v360_v60, %v361_v0 }
 0x24d   :  { %v375_v6 = vmax.f32 %v373_v62, %v374_v2 }
 0x24e   :  { %v363_v7 = vrot.slane %v362_v3, 4 }
 0x24f   :  { %v376_v8 = vrot.slane %v375_v6, 4  ;;  %v1871_v10 = vpop.f32.mrb[16].mxu0 }
 0x250   :  { %v364_v12 = vmax.f32 %v362_v3, %v363_v7  ;;  %v1873_v13 = vpop.f32.mrb[17].mxu0 }
 0x251   :  { %v377_v15 = vmax.f32 %v375_v6, %v376_v8  ;;  %v1875_v16 = vpop.f32.mrb[18].mxu0 }
 0x252   :  { %v365_v17 = vrot.slane %v364_v12, 2  ;;  %v1877_v18 = vpop.f32.mrb[19].mxu0 }
 0x253   :  { %v378_v19 = vrot.slane %v377_v15, 2 }
 0x254   :  { %v366_v20 = vmax.f32 %v364_v12, %v365_v17 }
 0x255   :  { %v379_v21 = vmax.f32 %v377_v15, %v378_v19 }
 0x256   :  { %v367_v22 = vrot.slane %v366_v20, 1 }
 0x257   :  { %v380_v23 = vrot.slane %v379_v21, 1  ;;  %v1879_v24 = vpop.f32.mrb[20].mxu0 }
 0x258   :  { %v368_v25 = vmax.f32 %v366_v20, %v367_v22  ;;  %v382_v26 = vmax.f32 %v1871_v10, %v1879_v24  ;;  %v1883_v27 = vpop.f32.mrb[21].mxu0 }
 0x259   :  { %v1885_v28 = vmax.f32 %v379_v21, %v380_v23  ;;  %v395_v30 = vmax.f32 %v1873_v13, %v1883_v27  ;;  %v1889_v31 = vpop.f32.mrb[22].mxu0 }
 0x25a   :  { %v473_v32 = vsub.f32 %v277_v39, %v368_v25  ;;  %v475_v33 = vsub.f32 %v281_v41, %v368_v25  ;;  %v477_v34 = vsub.f32 %v287_v43, %v368_v25  ;;  %v479_v35 = vsub.f32 %v291_v47, %v368_v25  ;;  %v1891_v36 = vpop.f32.mrb[23].mxu0 }
 0x25b   :  { %v481_v37 = vsub.f32 %v297_v51, %v368_v25  ;;  %v483_v38 = vsub.f32 %v301_v55, %v368_v25  ;;  %v485_v44 = vsub.f32 %v1859_v59, %v368_v25  ;;  %v487_v46 = vsub.f32 %v1865_v63, %v368_v25 }
 0x25c   :  { %v505_v48 = vmul.f32 1.442695, %v473_v32  ;;  %v509_v50 = vmul.f32 1.442695, %v475_v33  ;;  %v474_v52 = vsub.f32 %v1841_v40, %v1885_v28  ;;  %v513_v54 = vmul.f32 1.442695, %v477_v34 }
 0x25d   :  { %v476_v39 = vsub.f32 %v1843_v42, %v1885_v28  ;;  %v517_v41 = vmul.f32 1.442695, %v479_v35  ;;  %v478_v43 = vsub.f32 %v1845_v45, %v1885_v28  ;;  %v480_v47 = vsub.f32 %v1849_v49, %v1885_v28 }
 0x25e   :  { %1573 = vpow2.f32 %v505_v48  ;;  %v482_v51 = vsub.f32 %v1853_v53, %v1885_v28  ;;  %v484_v55 = vsub.f32 %v1856_v57, %v1885_v28  ;;  %v521_v56 = vmul.f32 1.442695, %v481_v37 }
 0x25f   :  { %1575 = vpow2.f32 %v509_v50  ;;  %v1907_v40 = vpop.f32.mrb[24].mxu0  ;;  %v486_v42 = vsub.f32 %v1862_v61, %v1885_v28  ;;  %v488_v58 = vsub.f32 %v1868_v1, %v1885_v28  ;;  %v525_v59 = vmul.f32 1.442695, %v483_v38 }
 0x260   :  { %v1913_v45 = vpop.f32.mrb[25].mxu0  ;;  %1577 = vpow2.f32 %v513_v54  ;;  %v507_v49 = vmul.f32 1.442695, %v474_v52  ;;  %v511_v60 = vmul.f32 1.442695, %v476_v39  ;;  %v383_v53 = vmax.f32 %v1875_v16, %v1889_v31 }
 0x261   :  { %1579 = vpow2.f32 %v517_v41  ;;  %v396_v57 = vmax.f32 %v1877_v18, %v1891_v36  ;;  %v1919_v62 = vpop.f32.mrb[26].mxu0  ;;  %v529_v61 = vmul.f32 1.442695, %v485_v44  ;;  %v384_v63 = vmax.f32 %v382_v26, %v1907_v40 }
 0x262   :  { %1581 = vpow2.f32 %v521_v56  ;;  %v397_v0 = vmax.f32 %v395_v30, %v1913_v45  ;;  %v1923_v1 = vpop.f32.mrb[27].mxu0  ;;  %v515_v2 = vmul.f32 1.442695, %v478_v43  ;;  %v385_v3 = vmax.f32 %v383_v53, %v1919_v62 }
 0x263   :  { %1583 = vpow2.f32 %v525_v59  ;;  %v398_v6 = vmax.f32 %v396_v57, %v1923_v1  ;;  %v533_v7 = vmul.f32 1.442695, %v487_v46  ;;  %v519_v8 = vmul.f32 1.442695, %v480_v47 }
 0x264   :  { %1585 = vpow2.f32 %v507_v49  ;;  %v523_v21 = vmul.f32 1.442695, %v482_v51  ;;  %v527_v32 = vmul.f32 1.442695, %v484_v55  ;;  %v531_v38 = vmul.f32 1.442695, %v486_v42 }
 0x265   :  { %1587 = vpow2.f32 %v511_v60  ;;  %v535_v54 = vmul.f32 1.442695, %v488_v58 }
 0x266   :  { %1589 = vpow2.f32 %v529_v61 }
 0x267   :  { %v1927_v12 = vpop.f32.mrb[28].mxu0  ;;  %1591 = vpow2.f32 %v515_v2 }
 0x268   :  { %v1929_v15 = vpop.eup %1573  ;;  %v386_v17 = vmax.f32 %v384_v63, %v1927_v12  ;;  %v1932_v19 = vpop.f32.mrb[29].mxu0  ;;  %1593 = vpow2.f32 %v533_v7 }
 0x269   :  { %v1934_v20 = vpop.eup %1575  ;;  %v399_v22 = vmax.f32 %v397_v0, %v1932_v19  ;;  %v1937_v23 = vpop.f32.mrb[30].mxu0  ;;  %1595 = vpow2.f32 %v519_v8 }
 0x26a   :  { %v569_v25 = vadd.f32 %v1934_v20, %v1929_v15  ;;  %v387_v26 = vmax.f32 %v385_v3, %v1937_v23  ;;  %v1942_v28 = vpop.f32.mrb[31].mxu0  ;;  %v1944_v30 = vpop.eup %1577  ;;  %1597 = vpow2.f32 %v523_v21 }
 0x26b   :  { %v400_v33 = vmax.f32 %v398_v6, %v1942_v28  ;;  %v1948_v37 = vpop.eup %1579  ;;  %1599 = vpow2.f32 %v527_v32 }
 0x26c   :  { %v570_v34 = vadd.f32 %v1944_v30, %v569_v25  ;;  %v388_v35 = vmax.f32 %v386_v17, %v387_v26  ;;  %v1950_v46 = vpop.eup %1581  ;;  %1601 = vpow2.f32 %v531_v38 }
 0x26d   :  { %v401_v44 = vmax.f32 %v399_v22, %v400_v33  ;;  %v1953_v52 = vpop.eup %1583  ;;  %1603 = vpow2.f32 %v535_v54 }
 0x26e   :  { %v571_v48 = vadd.f32 %v1948_v37, %v570_v34  ;;  %v389_v50 = vrot.slane %v388_v35, 4  ;;  %v1955_v41 = vpop.eup %1585 }
 0x26f   :  { %v402_v39 = vrot.slane %v401_v44, 4  ;;  %v1958_v51 = vpop.eup %1587 }
 0x270   :  { %v572_v43 = vadd.f32 %v1950_v46, %v571_v48  ;;  %v390_v47 = vmax.f32 %v388_v35, %v389_v50  ;;  %v1960_v56 = vpop.eup %1589  ;;  %v582_v59 = vadd.f32 %v1958_v51, %v1955_v41 }
 0x271   :  { %v403_v55 = vmax.f32 %v401_v44, %v402_v39  ;;  %v1965_v60 = vpop.eup %1591 }
 0x272   :  { %v573_v42 = vadd.f32 %v1953_v52, %v572_v43  ;;  %v391_v49 = vrot.slane %v390_v47, 2  ;;  %v1967_v53 = vpop.eup %1593  ;;  %v583_v61 = vadd.f32 %v1965_v60, %v582_v59 }
 0x273   :  { %v404_v58 = vrot.slane %v403_v55, 2  ;;  %v1971_v0 = vpop.eup %1595 }
 0x274   :  { %v574_v57 = vadd.f32 %v1960_v56, %v573_v42  ;;  %v392_v63 = vmax.f32 %v390_v47, %v391_v49  ;;  %v584_v6 = vadd.f32 %v1971_v0, %v583_v61  ;;  %v1977_v8 = vpop.eup %1597 }
 0x275   :  { %v405_v2 = vmax.f32 %v403_v55, %v404_v58  ;;  %v1980_v25 = vpop.eup %1599 }
 0x276   :  { %v1974_v3 = vadd.f32 %v1967_v53, %v574_v57  ;;  %v393_v7 = vrot.slane %v392_v63, 1  ;;  %v585_v21 = vadd.f32 %v1977_v8, %v584_v6  ;;  %v1985_v35 = vpop.eup %1601 }
 0x277   :  { %v406_v17 = vrot.slane %v405_v2, 1  ;;  %v1994_v47 = vpop.eup %1603 }
 0x278   :  { %v394_v22 = vmax.f32 %v392_v63, %v393_v7  ;;  %v586_v32 = vadd.f32 %v1980_v25, %v585_v21 }
 0x279   :  { %v407_v26 = vmax.f32 %v405_v2, %v406_v17 }
 0x27a   :  { %v489_v33 = vsub.f32 %v1871_v10, %v394_v22  ;;  %v491_v34 = vsub.f32 %v1875_v16, %v394_v22  ;;  %v493_v38 = vsub.f32 %v1879_v24, %v394_v22  ;;  %v495_v44 = vsub.f32 %v1889_v31, %v394_v22 }
 0x27b   :  { %v497_v48 = vsub.f32 %v1907_v40, %v394_v22  ;;  %v499_v50 = vsub.f32 %v1919_v62, %v394_v22  ;;  %v587_v54 = vadd.f32 %v1985_v35, %v586_v32  ;;  %v501_v39 = vsub.f32 %v1927_v12, %v394_v22 }
 0x27c   :  { %v503_v43 = vsub.f32 %v1937_v23, %v394_v22  ;;  %v537_v10 = vmul.f32 1.442695, %v489_v33  ;;  %v541_v16 = vmul.f32 1.442695, %v491_v34  ;;  %v545_v55 = vmul.f32 1.442695, %v493_v38 }
 0x27d   :  { %v490_v42 = vsub.f32 %v1873_v13, %v407_v26  ;;  %v1998_v24 = vadd.f32 %v1994_v47, %v587_v54  ;;  %v549_v31 = vmul.f32 1.442695, %v495_v44  ;;  %v553_v40 = vmul.f32 1.442695, %v497_v48 }
 0x27e   :  { %1605 = vpow2.f32 %v537_v10  ;;  %v557_v62 = vmul.f32 1.442695, %v499_v50  ;;  %v561_v59 = vmul.f32 1.442695, %v501_v39  ;;  %v492_v12 = vsub.f32 %v1877_v18, %v407_v26 }
 0x27f   :  { %1607 = vpow2.f32 %v541_v16  ;;  %v494_v23 = vsub.f32 %v1883_v27, %v407_v26  ;;  %v496_v49 = vsub.f32 %v1891_v36, %v407_v26  ;;  %v498_v58 = vsub.f32 %v1913_v45, %v407_v26 }
 0x280   :  { %1609 = vpow2.f32 %v545_v55  ;;  %v565_v13 = vmul.f32 1.442695, %v503_v43  ;;  %v500_v57 = vsub.f32 %v1923_v1, %v407_v26  ;;  %v502_v61 = vsub.f32 %v1932_v19, %v407_v26 }
 0x281   :  { %1611 = vpow2.f32 %v549_v31  ;;  %v504_v63 = vsub.f32 %v1942_v28, %v407_v26  ;;  %v539_v2 = vmul.f32 1.442695, %v490_v42  ;;  %v543_v6 = vmul.f32 1.442695, %v492_v12 }
 0x282   :  { %1613 = vpow2.f32 %v553_v40  ;;  %v547_v18 = vmul.f32 1.442695, %v494_v23  ;;  %v551_v27 = vmul.f32 1.442695, %v496_v49  ;;  %v555_v36 = vmul.f32 1.442695, %v498_v58 }
 0x283   :  { %1615 = vpow2.f32 %v557_v62  ;;  %v559_v45 = vmul.f32 1.442695, %v500_v57  ;;  %v563_v17 = vmul.f32 1.442695, %v502_v61  ;;  %v567_v21 = vmul.f32 1.442695, %v504_v63 }
 0x284   :  { %1617 = vpow2.f32 %v561_v59 }
 0x285   :  { %1619 = vpow2.f32 %v565_v13 }
 0x286   :  { %1621 = vpow2.f32 %v539_v2 }
 0x287   :  { %1623 = vpow2.f32 %v543_v6 }
 0x288   :  { %v1606_v7 = vpop.eup %1605  ;;  %1625 = vpow2.f32 %v547_v18 }
 0x289   :  { %v1608_v1 = vpop.eup %1607  ;;  %1627 = vpow2.f32 %v551_v27  ;;  %v2008_v19 = vmul.f32 %v1606_v7, %v1929_v15  ;;  %v576_v15 = vrot.slane %v1974_v3, 4 }
 0x28a   :  { %v1610_v28 = vpop.eup %1609  ;;  %v595_v22 = vadd.f32 %v1608_v1, %v1606_v7  ;;  %1629 = vpow2.f32 %v555_v36  ;;  %v2011_v26 = vmul.f32 %v1608_v1, %v1934_v20 }
 0x28b   :  { %v1612_v32 = vpop.eup %1611  ;;  %1631 = vpow2.f32 %v559_v45  ;;  %v2014_v33 = vmul.f32 %v1610_v28, %v1944_v30  ;;  %v577_v42 = vadd.f32 %v576_v15, %v1974_v3 }
 0x28c   :  { %v1614_v34 = vpop.eup %1613  ;;  %v596_v38 = vadd.f32 %v1610_v28, %v595_v22  ;;  %1633 = vpow2.f32 %v563_v17  ;;  %v2017_v44 = vmul.f32 %v1612_v32, %v1948_v37 }
 0x28d   :  { %v1616_v48 = vpop.eup %1615  ;;  %1635 = vpow2.f32 %v567_v21  ;;  %v2021_v50 = vmul.f32 %v1614_v34, %v1950_v46  ;;  %v578_v13 = vrot.slane %v577_v42, 2 }
 0x28e   :  { %v1618_v20 = vpop.eup %1617  ;;  %v597_v54 = vadd.f32 %v1612_v32, %v596_v38  ;;  %v2024_v39 = vmul.f32 %v1616_v48, %v1953_v52 }
 0x28f   :  { %v1620_v30 = vpop.eup %1619  ;;  %v2027_v43 = vmul.f32 %v1618_v20, %v1960_v56  ;;  %v579_v36 = vadd.f32 %v578_v13, %v577_v42 }
 0x290   :  { %v1622_v10 = vpop.eup %1621  ;;  %v598_v16 = vadd.f32 %v1614_v34, %v597_v54  ;;  %v637_v37 = vmul.f32 %v1620_v30, %v1967_v53 }
 0x291   :  { %v1624_v55 = vpop.eup %1623  ;;  %v2032_v31 = vmul.f32 %v1622_v10, %v1955_v41  ;;  %v589_v41 = vrot.slane %v1998_v24, 4  ;;  %v580_v1 = vrot.slane %v579_v36, 1 }
 0x292   :  { %v1626_v46 = vpop.eup %1625  ;;  %v599_v40 = vadd.f32 %v1616_v48, %v598_v16  ;;  %v608_v62 = vadd.f32 %v1624_v55, %v1622_v10  ;;  %v626_v52 = vmul.f32 %v1624_v55, %v1958_v51 }
 0x293   :  { %v1628_v59 = vpop.eup %1627  ;;  %v628_v12 = vmul.f32 %v1626_v46, %v1965_v60  ;;  %v581_v34 = vadd.f32 %v580_v1, %v579_v36  ;;  %v2068_v1 = vld [vmem:[%s2351_s4] sm:$0x3] }
 0x294   :  { %v1630_v56 = vpop.eup %1629  ;;  %v600_v23 = vadd.f32 %v1618_v20, %v599_v40  ;;  %v609_v49 = vadd.f32 %v1626_v46, %v608_v62  ;;  %v630_v58 = vmul.f32 %v1628_v59, %v1971_v0  ;;  %v590_v0 = vadd.f32 %v589_v41, %v1998_v24 }
 0x295   :  { %v1632_v53 = vpop.eup %1631  ;;  %v632_v3 = vmul.f32 %v1630_v56, %v1977_v8 }
 0x296   :  { %v1634_v57 = vpop.eup %1633  ;;  %v601_v61 = vadd.f32 %v1620_v30, %v600_v23  ;;  %v610_v63 = vadd.f32 %v1628_v59, %v609_v49  ;;  %v634_v2 = vmul.f32 %v1632_v53, %v1980_v25  ;;  %v591_v21 = vrot.slane %v590_v0, 2 }
 0x297   :  { %v1636_v51 = vpop.eup %1635  ;;  %v636_v6 = vmul.f32 %v1634_v57, %v1985_v35 }
 0x298   :  { %v602_v60 = vrot.slane %v601_v61, 4  ;;  %v611_v18 = vadd.f32 %v1630_v56, %v610_v63  ;;  %v638_v27 = vmul.f32 %v1636_v51, %v1994_v47  ;;  %v592_v38 = vadd.f32 %v591_v21, %v590_v0 }
 0x29a   :  { %v603_v45 = vadd.f32 %v602_v60, %v601_v61  ;;  %v612_v7 = vadd.f32 %v1632_v53, %v611_v18  ;;  %v593_v47 = vrot.slane %v592_v38, 1 }
 0x29c   :  { %v604_v8 = vrot.slane %v603_v45, 2  ;;  %v613_v17 = vadd.f32 %v1634_v57, %v612_v7  ;;  %v594_v30 = vadd.f32 %v593_v47, %v592_v38 }
 0x29e   :  { %v605_v28 = vadd.f32 %v604_v8, %v603_v45  ;;  %v614_v22 = vadd.f32 %v1636_v51, %v613_v17  ;;  %v1567_v45 = vld [vmem:[%s2347_s0 + $0x10] ss:$8 sps:$4 sm:$0x1f]  }
 0x29f   :  { %v796_v21 = vand.u32 %v1567_v45, %v1780_v4 }
 0x2a0   :  { %v606_v32 = vrot.slane %v605_v28, 1  ;;  %v615_v25 = vrot.slane %v614_v22, 4 }
 0x2a2   :  { %v607_v35 = vadd.f32 %v606_v32, %v605_v28  ;;  %v616_v48 = vadd.f32 %v615_v25, %v614_v22  ;;  %v1570_v28 = vld [vmem:[%s2348_s1 + $0x14] sm:$0xff]   ;;  %v1571_v22 = vld [vmem:[%s2348_s1 + $0x1c] sm:$0xff]  }
 0x2a4   :  { %v621_v15 = vmul.f32 %v607_v35, %v581_v34  ;;  %v617_v20 = vrot.slane %v616_v48, 2 }
 0x2a6   :  { %1637 = vrcp.f32 %v621_v15  ;;  %v618_v54 = vadd.f32 %v617_v20, %v616_v48 }
 0x2a8   :  { %v619_v24 = vrot.slane %v618_v54, 1 }
 0x2aa   :  { %v620_v10 = vadd.f32 %v619_v24, %v618_v54 }
 0x2ac   :  { %v622_v16 = vmul.f32 %v620_v10, %v594_v30 }
 0x2ae   :  { %1639 = vrcp.f32 %v622_v16 }
 0x2b0   :  { %v1638_v55 = vpop.eup %1637 }
 0x2b1   :  { %v641_v42 = vmul.f32 %v1638_v55, %v2008_v19  ;;  %v643_v46 = vmul.f32 %v1638_v55, %v2011_v26  ;;  %v645_v40 = vmul.f32 %v1638_v55, %v2014_v33  ;;  %v647_v62 = vmul.f32 %v1638_v55, %v2017_v44 }
 0x2b2   :  { %v649_v59 = vmul.f32 %v1638_v55, %v2021_v50  ;;  %v651_v56 = vmul.f32 %v1638_v55, %v2024_v39  ;;  %v653_v23 = vmul.f32 %v1638_v55, %v2027_v43  ;;  %v655_v49 = vmul.f32 %v1638_v55, %v637_v37  ;;  %v31_v43 = vld [vmem:[%s2352_s5] sm:$0xf] }
 0x2b3   :  { %v657_v53 = vpack.c.bf16 %v643_v46, %v641_v42  ;;  %v659_v13 = vpack.c.bf16 %v647_v62, %v645_v40  ;;  %718 = vperm.xlu1 %1557, %v31_v43  }
 0x2b4   :  { %v661_v57 = vpack.c.bf16 %v651_v56, %v649_v59  ;;  %v663_v41 = vpack.c.bf16 %v655_v49, %v653_v23 }
 0x2b8   :  { %v1640_v61 = vpop.eup %1639 }
 0x2b9   :  { %v642_v19 = vmul.f32 %v1640_v61, %v2032_v31  ;;  %v644_v63 = vmul.f32 %v1640_v61, %v626_v52  ;;  %v646_v26 = vmul.f32 %v1640_v61, %v628_v12  ;;  %v648_v51 = vmul.f32 %v1640_v61, %v630_v58 }
 0x2ba   :  { %v650_v33 = vmul.f32 %v1640_v61, %v632_v3  ;;  %v652_v60 = vmul.f32 %v1640_v61, %v634_v2  ;;  %v654_v44 = vmul.f32 %v1640_v61, %v636_v6  ;;  %v656_v18 = vmul.f32 %v1640_v61, %v638_v27  ;;  %v1569_v3 = vld [vmem:[%s2347_s0 + $0x14] ss:$8 sps:$4 sm:$0x1f]  }
 0x2bb   :  { %v658_v50 = vpack.c.bf16 %v644_v63, %v642_v19  ;;  %v660_v36 = vpack.c.bf16 %v648_v51, %v646_v26  ;;  %v799_v8 = vand.u32 %v1569_v3, %v1780_v4  ;;  %v1572_v4 = vld [vmem:[%s2348_s1 + $0x24] ss:$0 sps:$4 sm:$0xff]   ;;  %s1735_s1 = smov [#allocation2]  }
 0x2bc   :  { %v662_v39 = vpack.c.bf16 %v652_v60, %v650_v33  ;;  %v664_v0 = vpack.c.bf16 %v656_v18, %v654_v44  ;;  %v858_v32 = vsel %vm51_vm0, %v1572_v4, 0  ;;  %s1462_s22 = sshll.u32 %s1735_s1, 4  ;;  %s1463_s22 = int_to_ptr.vmem [resolvable:$true] %s1462_s22 }
 0x2bd   :  { %665 = vmatprep.subr.bf16.mxu1 %v658_v50  ;;  %s1709_s23 = scalar_lea.vmem %s1463_s22, 256  ;;  %p1714_p1 = scmp.lt.s32.totalorder %s1463_s22, %s1463_s22 }
 0x2be   :  { %666 = vmatpush1.bf16.msra.mxu1 %v657_v53  ;;  %p1710_p0 = scmp.ne.s32.totalorder %s1463_s22, %s1709_s23  ;;  %p1715_p2 = scmp.lt.s32.totalorder %s1709_s23, %s1709_s23 }
 0x2bf   :  { %667 = vmatprep.subr.bf16.mxu1 %v660_v36 }
 0x2c0   :  { %p1716_p3 = por %p1715_p2, %p1714_p1 }
 0x2c2   :  { %668 = vmatpush1.bf16.msra.mxu1 %v659_v13  ;;  %p1717_p4 = pnand %p1716_p3, %p1710_p0 }
 0x2c3   :  { %669 = vmatprep.subr.bf16.mxu1 %v662_v39 }
 0x2c6   :  { %670 = vmatpush1.bf16.msra.mxu1 %v661_v57 }
 0x2c7   :  { %671 = vmatprep.subr.bf16.mxu1 %v664_v0 }
 0x2ca   :  { %672 = vmatpush1.bf16.msra.mxu1 %v663_v41 }
 0x2cb   :  { %673 = vmatprep.subr.bf16.mxu1 %v658_v50 }
 0x2ce   :  { %674 = vmatpush1.bf16.msra.mxu1 %v657_v53 }
 0x2cf   :  { %675 = vmatprep.subr.bf16.mxu1 %v660_v36 }
 0x2d2   :  { %676 = vmatpush1.bf16.msra.mxu1 %v659_v13 }
 0x2d3   :  { %677 = vmatprep.subr.bf16.mxu1 %v662_v39 }
 0x2d6   :  { %678 = vmatpush1.bf16.msra.mxu1 %v661_v57 }
 0x2d7   :  { %679 = vmatprep.subr.bf16.mxu1 %v664_v0 }
 0x2da   :  { %680 = vmatpush1.bf16.msra.mxu1 %v663_v41 }
 0x2dd   :  { %698 = vmatmul.mubr.bf16.vlgmr.msra.gmra.mrb[8].mxu1 %v1822_v29 }
 0x2de   :  { %764 = vmatprep.mubr.bf16.mxu1 %v1734_v5 }
 0x3b0   :  { %v699_v37 = vpop.f32.mrb[8].mxu1 }
 0x3b1   :  { %v708_v31 = vrot.slane %v699_v37, 2  ;;  %v701_v52 = vpop.f32.mrb[9].mxu1 }
 0x3b2   :  { %v709_v12 = vrot.slane %v701_v52, 2  ;;  %v703_v58 = vpop.f32.mrb[10].mxu1 }
 0x3b3   :  { %v712_v2 = vmul.f32 %v708_v31, %v699_v37  ;;  %v704_v6 = vpop.f32.mrb[11].mxu1 }
 0x3b4   :  { %v713_v27 = vmul.f32 %v709_v12, %v701_v52 }
 0x3b5   :  { %v714_v29 = vpack.c.bf16 %v712_v2, %v712_v2 }
 0x3b6   :  { %v715_v7 = vpack.c.bf16 %v713_v27, %v713_v27 }
 0x3b7   :  { %v727_v17 = vsel %vm725_vm6, %v714_v29, 0 }
 0x3b8   :  { %1492 = vmatprep.subr.msk.bf16.mxu1 %vm725_vm6, %v715_v7 }
 0x3b9   :  { %733 = vmatpush1.bf16.msra.mxu1 %v727_v17 }
 0x3ba   :  { %801 = vmatprep.subr.bf16.mxu1 %v799_v8 }
 0x3bc   :  { %1493 = vmatmul.mubr.msk.bf16.vlgmr.msra.gmra.mrb[12].mxu1 %vm721_vm7, %v2068_v1 }
 0x3bd   :  { %802 = vmatpush1.bf16.msra.mxu1 %v796_v21  ;;  %833 = vmatprep.mubr.bf16.mxu1 %v1734_v5 }
 0x3be   :  { %1540 = vmatprep.subr.bf16.mxu1 %v1570_v28 }
 0x3c4   :  { %1503 = vmatmul.mubr.msk.bf16.vlgmr.msra.gmra.mrb[16].mxu1 %vm47_vm2, %v1793_v9  ;;  %v2092_v9 = vpop.permute.xlu1 %718 }
 0x3c5   :  { %1541 = vmatpush3.bf16.msra.mxu1 %v1570_v28  ;;  %1546 = vmatprep.mubr.msk.bf16.mxu1 %vm127_vm3, %v1801_v11 }
 0x3c6   :  { %1542 = vmatprep.subr.bf16.mxu1 %v1571_v22 }
 0x3c9   :  { %1543 = vmatpush3.bf16.msra.mxu1 %v1571_v22 }
 0x3ca   :  { %1551 = vmatprep.subr.msk.bf16.mxu1 %vm51_vm0, %v1572_v4 }
 0x3cd   :  { %1545 = vmatpush3.bf16.msra.mxu1 %v858_v32 }
 0x3d0   :  { %1547 = vmatmul.mubr.msk.bf16.vlgmr.msra.gmra.mrb[20].mxu1 %vm127_vm3, %v1815_v14 }
 0x3d1   :  { %1385 = vmatprep.mubr.bf16.mxu1 %v1734_v5 }
 0x48f   :  { %v766_v25 = vpop.f32.mrb[12].mxu1 }
 0x490   :  { %v767_v11 = vadd.f32 %v766_v25, %v2092_v9  ;;  %v768_v34 = vpop.f32.mrb[13].mxu1 }
 0x491   :  { %v769_v38 = vadd.f32 %v768_v34, %v2092_v9  ;;  %v770_v35 = vpop.f32.mrb[14].mxu1 }
 0x492   :  { %v771_v48 = vpop.f32.mrb[15].mxu1 }
 0x493   :  { %v775_v15 = vcombine.low %v767_v11, %v769_v38 }
 0x495   :  { %777 = vst [vmem:[#allocation2] sm:$0xff] %v775_v15 }
 0x497   :  { %v835_v20 = vpop.f32.mrb[16].mxu1 }
 0x498   :  { %v913_v47 = vpack.c.bf16 %v835_v20, %v835_v20  ;;  %v837_v54 = vpop.f32.mrb[17].mxu1 }
 0x499   :  { %v914_v24 = vpack.c.bf16 %v837_v54, %v837_v54  ;;  %v839_v30 = vpop.f32.mrb[18].mxu1 }
 0x49a   :  { %v959_v14 = vsel %vm236_vm4, %v913_v47, 0  ;;  %v840_v10 = vpop.f32.mrb[19].mxu1 }
 0x49b   :  { %1509 = vmatprep.subr.msk.bf16.mxu0 %vm236_vm4, %v914_v24 }
 0x49c   :  { %965 = vmatpush1.bf16.msra.mxu0 %v959_v14 }
 0x4a3   :  { %v1548_v16 = vpop.f32.mrb[20].mxu1 }
 0x4a4   :  { %v894_v55 = vpop.f32.mrb[21].mxu1 }
 0x4a5   :  { %v1549_v42 = vpop.f32.mrb[22].mxu1 }
 0x4a6   :  { %v910_v46 = vmax.f32 %v1548_v16, %v1549_v42  ;;  %v897_v40 = vpop.f32.mrb[23].mxu1 }
 0x4a7   :  { %v909_v62 = vmax.f32 %v894_v55, %v897_v40 }
 0x4a9   :  { %v911_v59 = vmax.f32 %v909_v62, %v910_v46 }
 0x4ab   :  { %v2098_v56 = vpack.c.bf16 %v911_v59, %v911_v59 }
 0x4ad   :  { %v916_v23 = vrot.slane %v2098_v56, 2 }
 0x4af   :  { %918 = vxpose.xlu0.c.b16.start.end [1/1] (short) %v916_v23, 128 }
 0x4b8   :  { %1558 = vset.pattern.permute.xlu0 %v1734_v5 }
 0x515   :  { %v926_v49 = vpop.trf.xlu0 }
 0x516   :  { %1510 = vmatmul.mubr.msk.bf16.vlgmr.msra.gmra.mrb[32].mxu0 %vm211_vm5, %v926_v49 }
 0x517   :  { %1006 = vmatprep.mubr.bf16.mxu0 %v1734_v5 }
 0x519   :  { %v927_v53 = vpop.trf.xlu0 }
 0x51d   :  { %v928_v13 = vpop.trf.xlu0 }
 0x51e   :  { %1511 = vmatmul.mubr.msk.bf16.gmra.mrb[36].mxu0 %vm211_vm5, %v927_v53 }
 0x51f   :  { %1016 = vmatprep.mubr.bf16.mxu0 %v1734_v5 }
 0x521   :  { %v929_v57 = vpop.trf.xlu0 }
 0x525   :  { %v930_v41 = vpop.trf.xlu0 }
 0x526   :  { %1512 = vmatmul.mubr.msk.bf16.gmra.mrb[40].mxu0 %vm211_vm5, %v928_v13 }
 0x527   :  { %1026 = vmatprep.mubr.bf16.mxu0 %v1734_v5 }
 0x529   :  { %v931_v61 = vpop.trf.xlu0 }
 0x52d   :  { %v932_v19 = vpop.trf.xlu0 }
 0x52e   :  { %1513 = vmatmul.mubr.msk.bf16.gmra.mrb[44].mxu0 %vm211_vm5, %v929_v57 }
 0x52f   :  { %1036 = vmatprep.mubr.bf16.mxu0 %v1734_v5 }
 0x531   :  { %v933_v63 = vpop.trf.xlu0 }
 0x536   :  { %1514 = vmatmul.mubr.msk.bf16.gmra.mrb[48].mxu0 %vm211_vm5, %v930_v41 }
 0x537   :  { %1046 = vmatprep.mubr.bf16.mxu0 %v1734_v5 }
 0x53e   :  { %1515 = vmatmul.mubr.msk.bf16.gmra.mrb[52].mxu0 %vm211_vm5, %v931_v61 }
 0x53f   :  { %1056 = vmatprep.mubr.bf16.mxu0 %v1734_v5 }
 0x546   :  { %1516 = vmatmul.mubr.msk.bf16.gmra.mrb[56].mxu0 %vm211_vm5, %v932_v19 }
 0x547   :  { %1066 = vmatprep.mubr.bf16.mxu0 %v1734_v5 }
 0x54e   :  { %1517 = vmatmul.mubr.msk.bf16.gmra.mrb[60].mxu0 %vm211_vm5, %v933_v63 }
 0x5e9   :  { %v998_v26 = vpop.f32.mrb[32].mxu0 }
 0x5ea   :  { %v2117_v51 = vpop.f32.mrb[33].mxu0 }
 0x5eb   :  { %v1002_v33 = vpop.f32.mrb[34].mxu0 }
 0x5ec   :  { %v2119_v60 = vpop.f32.mrb[35].mxu0 }
 0x5f1   :  { %v1008_v44 = vpop.f32.mrb[36].mxu0 }
 0x5f2   :  { %v1077_v18 = vmax.f32 %v998_v26, %v1008_v44  ;;  %v2121_v50 = vpop.f32.mrb[37].mxu0 }
 0x5f3   :  { %v1090_v36 = vmax.f32 %v2117_v51, %v2121_v50  ;;  %v1012_v39 = vpop.f32.mrb[38].mxu0 }
 0x5f4   :  { %v1078_v0 = vmax.f32 %v1002_v33, %v1012_v39  ;;  %v2125_v43 = vpop.f32.mrb[39].mxu0 }
 0x5f5   :  { %v1091_v37 = vmax.f32 %v2119_v60, %v2125_v43 }
 0x5f9   :  { %v1018_v31 = vpop.f32.mrb[40].mxu0 }
 0x5fa   :  { %v1079_v52 = vmax.f32 %v1077_v18, %v1018_v31  ;;  %v2129_v12 = vpop.f32.mrb[41].mxu0 }
 0x5fb   :  { %v1092_v58 = vmax.f32 %v1090_v36, %v2129_v12  ;;  %v1022_v3 = vpop.f32.mrb[42].mxu0 }
 0x5fc   :  { %v1080_v2 = vmax.f32 %v1078_v0, %v1022_v3  ;;  %v2132_v6 = vpop.f32.mrb[43].mxu0 }
 0x5fd   :  { %v1093_v27 = vmax.f32 %v1091_v37, %v2132_v6 }
 0x601   :  { %v2135_v29 = vpop.f32.mrb[44].mxu0 }
 0x602   :  { %v1081_v45 = vmax.f32 %v1079_v52, %v2135_v29  ;;  %v2138_v7 = vpop.f32.mrb[45].mxu0 }
 0x603   :  { %v1094_v8 = vmax.f32 %v1092_v58, %v2138_v7  ;;  %v2141_v17 = vpop.f32.mrb[46].mxu0 }
 0x604   :  { %v1082_v21 = vmax.f32 %v1080_v2, %v2141_v17  ;;  %v2144_v28 = vpop.f32.mrb[47].mxu0 }
 0x605   :  { %v1095_v22 = vmax.f32 %v1093_v27, %v2144_v28 }
 0x606   :  { %v1083_v4 = vmax.f32 %v1081_v45, %v1082_v21 }
 0x607   :  { %v1096_v32 = vmax.f32 %v1094_v8, %v1095_v22 }
 0x608   :  { %v1084_v25 = vrot.slane %v1083_v4, 4 }
 0x609   :  { %v1097_v11 = vrot.slane %v1096_v32, 4  ;;  %v2147_v34 = vpop.f32.mrb[48].mxu0 }
 0x60a   :  { %v1085_v38 = vmax.f32 %v1083_v4, %v1084_v25  ;;  %v2149_v35 = vpop.f32.mrb[49].mxu0 }
 0x60b   :  { %v1098_v48 = vmax.f32 %v1096_v32, %v1097_v11  ;;  %v2151_v15 = vpop.f32.mrb[50].mxu0 }
 0x60c   :  { %v1086_v20 = vrot.slane %v1085_v38, 2  ;;  %v2153_v47 = vpop.f32.mrb[51].mxu0 }
 0x60d   :  { %v1099_v54 = vrot.slane %v1098_v48, 2 }
 0x60e   :  { %v1087_v24 = vmax.f32 %v1085_v38, %v1086_v20 }
 0x60f   :  { %v1100_v30 = vmax.f32 %v1098_v48, %v1099_v54 }
 0x610   :  { %v1088_v14 = vrot.slane %v1087_v24, 1 }
 0x611   :  { %v1101_v10 = vrot.slane %v1100_v30, 1  ;;  %v2155_v16 = vpop.f32.mrb[52].mxu0 }
 0x612   :  { %v1089_v55 = vmax.f32 %v1087_v24, %v1088_v14  ;;  %v1103_v42 = vmax.f32 %v2147_v34, %v2155_v16  ;;  %v2159_v46 = vpop.f32.mrb[53].mxu0 }
 0x613   :  { %v2161_v40 = vmax.f32 %v1100_v30, %v1101_v10  ;;  %v1116_v62 = vmax.f32 %v2149_v35, %v2159_v46  ;;  %v2165_v59 = vpop.f32.mrb[54].mxu0 }
 0x614   :  { %v1161_v23 = vsub.f32 %v998_v26, %v1089_v55  ;;  %v1163_v49 = vsub.f32 %v1002_v33, %v1089_v55  ;;  %v1165_v53 = vsub.f32 %v1008_v44, %v1089_v55  ;;  %v1167_v13 = vsub.f32 %v1012_v39, %v1089_v55  ;;  %v2167_v57 = vpop.f32.mrb[55].mxu0 }
 0x615   :  { %v1169_v41 = vsub.f32 %v1018_v31, %v1089_v55  ;;  %v1171_v61 = vsub.f32 %v1022_v3, %v1089_v55  ;;  %v1173_v19 = vsub.f32 %v2135_v29, %v1089_v55  ;;  %v1175_v63 = vsub.f32 %v2141_v17, %v1089_v55 }
 0x616   :  { %v1193_v18 = vmul.f32 1.442695, %v1161_v23  ;;  %v1197_v36 = vmul.f32 1.442695, %v1163_v49  ;;  %v1162_v0 = vsub.f32 %v2117_v51, %v2161_v40  ;;  %v1201_v37 = vmul.f32 1.442695, %v1165_v53 }
 0x617   :  { %v1164_v26 = vsub.f32 %v2119_v60, %v2161_v40  ;;  %v1205_v33 = vmul.f32 1.442695, %v1167_v13  ;;  %v1166_v44 = vsub.f32 %v2121_v50, %v2161_v40  ;;  %v1168_v39 = vsub.f32 %v2125_v43, %v2161_v40 }
 0x618   :  { %1641 = vpow2.f32 %v1193_v18  ;;  %v1170_v31 = vsub.f32 %v2129_v12, %v2161_v40  ;;  %v1172_v52 = vsub.f32 %v2132_v6, %v2161_v40  ;;  %v1209_v58 = vmul.f32 1.442695, %v1169_v41 }
 0x619   :  { %1643 = vpow2.f32 %v1197_v36  ;;  %v2183_v51 = vpop.f32.mrb[56].mxu0  ;;  %v1174_v60 = vsub.f32 %v2138_v7, %v2161_v40  ;;  %v1176_v3 = vsub.f32 %v2144_v28, %v2161_v40  ;;  %v1213_v2 = vmul.f32 1.442695, %v1171_v61 }
 0x61a   :  { %v2189_v50 = vpop.f32.mrb[57].mxu0  ;;  %1645 = vpow2.f32 %v1201_v37  ;;  %v1195_v43 = vmul.f32 1.442695, %v1162_v0  ;;  %v1199_v27 = vmul.f32 1.442695, %v1164_v26  ;;  %v1104_v12 = vmax.f32 %v2151_v15, %v2165_v59 }
 0x61b   :  { %1647 = vpow2.f32 %v1205_v33  ;;  %v1117_v6 = vmax.f32 %v2153_v47, %v2167_v57  ;;  %v2195_v29 = vpop.f32.mrb[58].mxu0  ;;  %v1217_v45 = vmul.f32 1.442695, %v1173_v19  ;;  %v1105_v7 = vmax.f32 %v1103_v42, %v2183_v51 }
 0x61c   :  { %1649 = vpow2.f32 %v1209_v58  ;;  %v1118_v8 = vmax.f32 %v1116_v62, %v2189_v50  ;;  %v2199_v17 = vpop.f32.mrb[59].mxu0  ;;  %v1203_v21 = vmul.f32 1.442695, %v1166_v44  ;;  %v1106_v28 = vmax.f32 %v1104_v12, %v2195_v29 }
 0x61d   :  { %1651 = vpow2.f32 %v1213_v2  ;;  %v1119_v22 = vmax.f32 %v1117_v6, %v2199_v17  ;;  %v1221_v4 = vmul.f32 1.442695, %v1175_v63  ;;  %v1207_v32 = vmul.f32 1.442695, %v1168_v39 }
 0x61e   :  { %1653 = vpow2.f32 %v1195_v43  ;;  %v1211_v54 = vmul.f32 1.442695, %v1170_v31  ;;  %v1215_v40 = vmul.f32 1.442695, %v1172_v52  ;;  %v1219_v13 = vmul.f32 1.442695, %v1174_v60 }
 0x61f   :  { %1655 = vpow2.f32 %v1199_v27  ;;  %v1223_v36 = vmul.f32 1.442695, %v1176_v3 }
 0x620   :  { %1657 = vpow2.f32 %v1217_v45 }
 0x621   :  { %v2203_v25 = vpop.f32.mrb[60].mxu0  ;;  %1659 = vpow2.f32 %v1203_v21 }
 0x622   :  { %v2205_v11 = vpop.eup %1641  ;;  %v1107_v38 = vmax.f32 %v1105_v7, %v2203_v25  ;;  %v2208_v48 = vpop.f32.mrb[61].mxu0  ;;  %1661 = vpow2.f32 %v1221_v4 }
 0x623   :  { %v2210_v20 = vpop.eup %1643  ;;  %v1120_v24 = vmax.f32 %v1118_v8, %v2208_v48  ;;  %v2213_v30 = vpop.f32.mrb[62].mxu0  ;;  %1663 = vpow2.f32 %v1207_v32 }
 0x624   :  { %v1257_v14 = vadd.f32 %v2210_v20, %v2205_v11  ;;  %v1108_v10 = vmax.f32 %v1106_v28, %v2213_v30  ;;  %v2218_v55 = vpop.f32.mrb[63].mxu0  ;;  %v2220_v42 = vpop.eup %1645  ;;  %1665 = vpow2.f32 %v1211_v54 }
 0x625   :  { %v1121_v62 = vmax.f32 %v1119_v22, %v2218_v55  ;;  %v2224_v53 = vpop.eup %1647  ;;  %1667 = vpow2.f32 %v1215_v40 }
 0x626   :  { %v1258_v23 = vadd.f32 %v2220_v42, %v1257_v14  ;;  %v1109_v49 = vmax.f32 %v1107_v38, %v1108_v10  ;;  %v2226_v61 = vpop.eup %1649  ;;  %1669 = vpow2.f32 %v1219_v13 }
 0x627   :  { %v1122_v41 = vmax.f32 %v1120_v24, %v1121_v62  ;;  %v2229_v18 = vpop.eup %1651  ;;  %1671 = vpow2.f32 %v1223_v36 }
 0x628   :  { %v1259_v19 = vadd.f32 %v2224_v53, %v1258_v23  ;;  %v1110_v63 = vrot.slane %v1109_v49, 4  ;;  %v2231_v37 = vpop.eup %1653 }
 0x629   :  { %v1123_v0 = vrot.slane %v1122_v41, 4  ;;  %v2234_v44 = vpop.eup %1655 }
 0x62a   :  { %v1260_v26 = vadd.f32 %v2226_v61, %v1259_v19  ;;  %v1111_v33 = vmax.f32 %v1109_v49, %v1110_v63  ;;  %v2236_v31 = vpop.eup %1657  ;;  %v1270_v58 = vadd.f32 %v2234_v44, %v2231_v37 }
 0x62b   :  { %v1124_v39 = vmax.f32 %v1122_v41, %v1123_v0  ;;  %v2241_v2 = vpop.eup %1659 }
 0x62c   :  { %v1261_v52 = vadd.f32 %v2229_v18, %v1260_v26  ;;  %v1112_v60 = vrot.slane %v1111_v33, 2  ;;  %v2243_v43 = vpop.eup %1661  ;;  %v1271_v12 = vadd.f32 %v2241_v2, %v1270_v58 }
 0x62d   :  { %v1125_v3 = vrot.slane %v1124_v39, 2  ;;  %v2247_v45 = vpop.eup %1663 }
 0x62e   :  { %v1262_v27 = vadd.f32 %v2236_v31, %v1261_v52  ;;  %v1113_v6 = vmax.f32 %v1111_v33, %v1112_v60  ;;  %v1272_v21 = vadd.f32 %v2247_v45, %v1271_v12  ;;  %v2253_v22 = vpop.eup %1665 }
 0x62f   :  { %v1126_v7 = vmax.f32 %v1124_v39, %v1125_v3  ;;  %v2256_v54 = vpop.eup %1667 }
 0x630   :  { %v2250_v8 = vadd.f32 %v2243_v43, %v1262_v27  ;;  %v1114_v28 = vrot.slane %v1113_v6, 1  ;;  %v1273_v32 = vadd.f32 %v2253_v22, %v1272_v21  ;;  %v2261_v62 = vpop.eup %1669 }
 0x631   :  { %v1127_v4 = vrot.slane %v1126_v7, 1  ;;  %v2270_v0 = vpop.eup %1671 }
 0x632   :  { %v1115_v38 = vmax.f32 %v1113_v6, %v1114_v28  ;;  %v1274_v14 = vadd.f32 %v2256_v54, %v1273_v32 }
 0x633   :  { %v1128_v24 = vmax.f32 %v1126_v7, %v1127_v4 }
 0x634   :  { %v1177_v10 = vsub.f32 %v2147_v34, %v1115_v38  ;;  %v1179_v40 = vsub.f32 %v2151_v15, %v1115_v38  ;;  %v1181_v23 = vsub.f32 %v2155_v16, %v1115_v38  ;;  %v1183_v49 = vsub.f32 %v2165_v59, %v1115_v38 }
 0x635   :  { %v1185_v13 = vsub.f32 %v2183_v51, %v1115_v38  ;;  %v1187_v41 = vsub.f32 %v2195_v29, %v1115_v38  ;;  %v1275_v19 = vadd.f32 %v2261_v62, %v1274_v14  ;;  %v1189_v63 = vsub.f32 %v2203_v25, %v1115_v38 }
 0x636   :  { %v1191_v36 = vsub.f32 %v2213_v30, %v1115_v38  ;;  %v1225_v34 = vmul.f32 1.442695, %v1177_v10  ;;  %v1229_v15 = vmul.f32 1.442695, %v1179_v40  ;;  %v1233_v26 = vmul.f32 1.442695, %v1181_v23 }
 0x637   :  { %v1178_v33 = vsub.f32 %v2149_v35, %v1128_v24  ;;  %v2274_v16 = vadd.f32 %v2270_v0, %v1275_v19  ;;  %v1237_v59 = vmul.f32 1.442695, %v1183_v49  ;;  %v1241_v51 = vmul.f32 1.442695, %v1185_v13 }
 0x638   :  { %1673 = vpow2.f32 %v1225_v34  ;;  %v1245_v29 = vmul.f32 1.442695, %v1187_v41  ;;  %v1249_v39 = vmul.f32 1.442695, %v1189_v63  ;;  %v1180_v25 = vsub.f32 %v2153_v47, %v1128_v24 }
 0x639   :  { %1675 = vpow2.f32 %v1229_v15  ;;  %v1182_v30 = vsub.f32 %v2159_v46, %v1128_v24  ;;  %v1184_v52 = vsub.f32 %v2167_v57, %v1128_v24  ;;  %v1186_v58 = vsub.f32 %v2189_v50, %v1128_v24 }
 0x63a   :  { %1677 = vpow2.f32 %v1233_v26  ;;  %v1253_v35 = vmul.f32 1.442695, %v1191_v36  ;;  %v1188_v60 = vsub.f32 %v2199_v17, %v1128_v24  ;;  %v1190_v3 = vsub.f32 %v2208_v48, %v1128_v24 }
 0x63b   :  { %1679 = vpow2.f32 %v1237_v59  ;;  %v1192_v27 = vsub.f32 %v2218_v55, %v1128_v24  ;;  %v1227_v12 = vmul.f32 1.442695, %v1178_v33  ;;  %v1231_v6 = vmul.f32 1.442695, %v1180_v25 }
 0x63c   :  { %1681 = vpow2.f32 %v1241_v51  ;;  %v1235_v47 = vmul.f32 1.442695, %v1182_v30  ;;  %v1239_v46 = vmul.f32 1.442695, %v1184_v52  ;;  %v1243_v57 = vmul.f32 1.442695, %v1186_v58 }
 0x63d   :  { %1683 = vpow2.f32 %v1245_v29  ;;  %v1247_v50 = vmul.f32 1.442695, %v1188_v60  ;;  %v1251_v21 = vmul.f32 1.442695, %v1190_v3  ;;  %v1255_v28 = vmul.f32 1.442695, %v1192_v27 }
 0x63e   :  { %1685 = vpow2.f32 %v1249_v39 }
 0x63f   :  { %1687 = vpow2.f32 %v1253_v35 }
 0x640   :  { %1689 = vpow2.f32 %v1227_v12 }
 0x641   :  { %1691 = vpow2.f32 %v1231_v6 }
 0x642   :  { %v1674_v7 = vpop.eup %1673  ;;  %1693 = vpow2.f32 %v1235_v47 }
 0x643   :  { %v1676_v17 = vpop.eup %1675  ;;  %1695 = vpow2.f32 %v1239_v46  ;;  %v2284_v48 = vmul.f32 %v1674_v7, %v2205_v11  ;;  %v1264_v11 = vrot.slane %v2250_v8, 4 }
 0x644   :  { %v1678_v55 = vpop.eup %1677  ;;  %v1283_v4 = vadd.f32 %v1676_v17, %v1674_v7  ;;  %1697 = vpow2.f32 %v1243_v57  ;;  %v2287_v32 = vmul.f32 %v1676_v17, %v2210_v20 }
 0x645   :  { %v1680_v38 = vpop.eup %1679  ;;  %1699 = vpow2.f32 %v1247_v50  ;;  %v2290_v24 = vmul.f32 %v1678_v55, %v2220_v42  ;;  %v1265_v15 = vadd.f32 %v1264_v11, %v2250_v8 }
 0x646   :  { %v1682_v14 = vpop.eup %1681  ;;  %v1284_v10 = vadd.f32 %v1678_v55, %v1283_v4  ;;  %1701 = vpow2.f32 %v1251_v21  ;;  %v2293_v40 = vmul.f32 %v1680_v38, %v2224_v53 }
 0x647   :  { %v1684_v23 = vpop.eup %1683  ;;  %1703 = vpow2.f32 %v1255_v28  ;;  %v2297_v49 = vmul.f32 %v1682_v14, %v2226_v61  ;;  %v1266_v52 = vrot.slane %v1265_v15, 2 }
 0x648   :  { %v1686_v20 = vpop.eup %1685  ;;  %v1285_v13 = vadd.f32 %v1680_v38, %v1284_v10  ;;  %v2300_v41 = vmul.f32 %v1684_v23, %v2229_v18 }
 0x649   :  { %v1688_v42 = vpop.eup %1687  ;;  %v2303_v19 = vmul.f32 %v1686_v20, %v2236_v31  ;;  %v1267_v47 = vadd.f32 %v1266_v52, %v1265_v15 }
 0x64a   :  { %v1690_v63 = vpop.eup %1689  ;;  %v1286_v36 = vadd.f32 %v1682_v14, %v1285_v13  ;;  %v1325_v53 = vmul.f32 %v1688_v42, %v2243_v43 }
 0x64b   :  { %v1692_v34 = vpop.eup %1691  ;;  %v2308_v26 = vmul.f32 %v1690_v63, %v2231_v37  ;;  %v1277_v37 = vrot.slane %v2274_v16, 4  ;;  %v1268_v7 = vrot.slane %v1267_v47, 1 }
 0x64c   :  { %v1694_v61 = vpop.eup %1693  ;;  %v1287_v33 = vadd.f32 %v1684_v23, %v1286_v36  ;;  %v1296_v59 = vadd.f32 %v1692_v34, %v1690_v63  ;;  %v1314_v18 = vmul.f32 %v1692_v34, %v2234_v44 }
 0x64d   :  { %v1696_v51 = vpop.eup %1695  ;;  %v1316_v29 = vmul.f32 %v1694_v61, %v2241_v2  ;;  %v1269_v4 = vadd.f32 %v1268_v7, %v1267_v47 }
 0x64e   :  { %v1698_v31 = vpop.eup %1697  ;;  %v1288_v39 = vadd.f32 %v1686_v20, %v1287_v33  ;;  %v1297_v25 = vadd.f32 %v1694_v61, %v1296_v59  ;;  %v1318_v30 = vmul.f32 %v1696_v51, %v2247_v45  ;;  %v1278_v45 = vadd.f32 %v1277_v37, %v2274_v16 }
 0x64f   :  { %v1700_v43 = vpop.eup %1699  ;;  %v1320_v8 = vmul.f32 %v1698_v31, %v2253_v22 }
 0x650   :  { %v1702_v58 = vpop.eup %1701  ;;  %v1289_v35 = vadd.f32 %v1688_v42, %v1288_v39  ;;  %v1298_v60 = vadd.f32 %v1696_v51, %v1297_v25  ;;  %v1322_v3 = vmul.f32 %v1700_v43, %v2256_v54  ;;  %v1279_v21 = vrot.slane %v1278_v45, 2 }
 0x651   :  { %v1704_v44 = vpop.eup %1703  ;;  %v1324_v27 = vmul.f32 %v1702_v58, %v2261_v62 }
 0x652   :  { %v1290_v2 = vrot.slane %v1289_v35, 4  ;;  %v1299_v12 = vadd.f32 %v1698_v31, %v1298_v60  ;;  %v1326_v6 = vmul.f32 %v1704_v44, %v2270_v0  ;;  %v1280_v38 = vadd.f32 %v1279_v21, %v1278_v45 }
 0x654   :  { %v1291_v46 = vadd.f32 %v1290_v2, %v1289_v35  ;;  %v1300_v57 = vadd.f32 %v1700_v43, %v1299_v12  ;;  %v1281_v0 = vrot.slane %v1280_v38, 1 }
 0x656   :  { %v1292_v22 = vrot.slane %v1291_v46, 2  ;;  %v1301_v50 = vadd.f32 %v1702_v58, %v1300_v57  ;;  %v1282_v20 = vadd.f32 %v1281_v0, %v1280_v38 }
 0x658   :  { %v1293_v17 = vadd.f32 %v1292_v22, %v1291_v46  ;;  %v1302_v28 = vadd.f32 %v1704_v44, %v1301_v50 }
 0x65a   :  { %v1294_v55 = vrot.slane %v1293_v17, 1  ;;  %v1303_v54 = vrot.slane %v1302_v28, 4 }
 0x65c   :  { %v1295_v62 = vadd.f32 %v1294_v55, %v1293_v17  ;;  %v1304_v14 = vadd.f32 %v1303_v54, %v1302_v28 }
 0x65e   :  { %v1309_v10 = vmul.f32 %v1295_v62, %v1269_v4  ;;  %v1305_v23 = vrot.slane %v1304_v14, 2 }
 0x660   :  { %1705 = vrcp.f32 %v1309_v10  ;;  %v1306_v11 = vadd.f32 %v1305_v23, %v1304_v14 }
 0x662   :  { %v1307_v16 = vrot.slane %v1306_v11, 1 }
 0x664   :  { %v1308_v13 = vadd.f32 %v1307_v16, %v1306_v11 }
 0x666   :  { %v1310_v42 = vmul.f32 %v1308_v13, %v1282_v20 }
 0x668   :  { %1707 = vrcp.f32 %v1310_v42 }
 0x66a   :  { %v1706_v63 = vpop.eup %1705 }
 0x66b   :  { %v1329_v36 = vmul.f32 %v1706_v63, %v2284_v48  ;;  %v1331_v34 = vmul.f32 %v1706_v63, %v2287_v32  ;;  %v1333_v15 = vmul.f32 %v1706_v63, %v2290_v24  ;;  %v1335_v61 = vmul.f32 %v1706_v63, %v2293_v40 }
 0x66c   :  { %v1337_v33 = vmul.f32 %v1706_v63, %v2297_v49  ;;  %v1339_v59 = vmul.f32 %v1706_v63, %v2300_v41  ;;  %v1341_v51 = vmul.f32 %v1706_v63, %v2303_v19  ;;  %v1343_v31 = vmul.f32 %v1706_v63, %v1325_v53 }
 0x66d   :  { %v1345_v39 = vpack.c.bf16 %v1331_v34, %v1329_v36  ;;  %v1347_v25 = vpack.c.bf16 %v1335_v61, %v1333_v15 }
 0x66e   :  { %v1349_v43 = vpack.c.bf16 %v1339_v59, %v1337_v33  ;;  %v1351_v52 = vpack.c.bf16 %v1343_v31, %v1341_v51 }
 0x672   :  { %v1708_v58 = vpop.eup %1707 }
 0x673   :  { %v1330_v48 = vmul.f32 %v1708_v58, %v2308_v26  ;;  %v1332_v37 = vmul.f32 %v1708_v58, %v1314_v18  ;;  %v1334_v32 = vmul.f32 %v1708_v58, %v1316_v29  ;;  %v1336_v35 = vmul.f32 %v1708_v58, %v1318_v30 }
 0x674   :  { %v1338_v24 = vmul.f32 %v1708_v58, %v1320_v8  ;;  %v1340_v60 = vmul.f32 %v1708_v58, %v1322_v3  ;;  %v1342_v40 = vmul.f32 %v1708_v58, %v1324_v27  ;;  %v1344_v44 = vmul.f32 %v1708_v58, %v1326_v6 }
 0x675   :  { %v1346_v49 = vpack.c.bf16 %v1332_v37, %v1330_v48  ;;  %v1348_v2 = vpack.c.bf16 %v1336_v35, %v1334_v32 }
 0x676   :  { %v1350_v41 = vpack.c.bf16 %v1340_v60, %v1338_v24  ;;  %v1352_v12 = vpack.c.bf16 %v1344_v44, %v1342_v40 }
 0x677   :  { %1353 = vmatprep.subr.bf16.mxu1 %v1346_v49 }
 0x678   :  { %1354 = vmatpush1.bf16.msra.mxu1 %v1345_v39 }
 0x679   :  { %1355 = vmatprep.subr.bf16.mxu1 %v1348_v2 }
 0x67c   :  { %1356 = vmatpush1.bf16.msra.mxu1 %v1347_v25 }
 0x67d   :  { %1357 = vmatprep.subr.bf16.mxu1 %v1350_v41 }
 0x680   :  { %1358 = vmatpush1.bf16.msra.mxu1 %v1349_v43 }
 0x681   :  { %1359 = vmatprep.subr.bf16.mxu1 %v1352_v12 }
 0x684   :  { %1360 = vmatpush1.bf16.msra.mxu1 %v1351_v52 }
 0x685   :  { %1361 = vmatprep.subr.bf16.mxu1 %v1346_v49 }
 0x688   :  { %1362 = vmatpush1.bf16.msra.mxu1 %v1345_v39 }
 0x689   :  { %1363 = vmatprep.subr.bf16.mxu1 %v1348_v2 }
 0x68c   :  { %1364 = vmatpush1.bf16.msra.mxu1 %v1347_v25 }
 0x68d   :  { %1365 = vmatprep.subr.bf16.mxu1 %v1350_v41 }
 0x690   :  { %1366 = vmatpush1.bf16.msra.mxu1 %v1349_v43 }
 0x691   :  { %1367 = vmatprep.subr.bf16.mxu1 %v1352_v12 }
 0x694   :  { %1368 = vmatpush1.bf16.msra.mxu1 %v1351_v52 }
 0x697   :  { %1386 = vmatmul.mubr.bf16.vlgmr.msra.gmra.mrb[24].mxu1 %v2098_v56 }
 0x698   :  { %1442 = vmatprep.mubr.bf16.mxu1 %v1734_v5 }
 0x76a   :  { %v1387_v19 = vpop.f32.mrb[24].mxu1 }
 0x76b   :  { %v1396_v53 = vrot.slane %v1387_v19, 2  ;;  %v1389_v26 = vpop.f32.mrb[25].mxu1 }
 0x76c   :  { %v1397_v18 = vrot.slane %v1389_v26, 2  ;;  %v1391_v29 = vpop.f32.mrb[26].mxu1 }
 0x76d   :  { %v1400_v30 = vmul.f32 %v1396_v53, %v1387_v19  ;;  %v1392_v8 = vpop.f32.mrb[27].mxu1 }
 0x76e   :  { %v1401_v3 = vmul.f32 %v1397_v18, %v1389_v26 }
 0x76f   :  { %v1402_v27 = vpack.c.bf16 %v1400_v30, %v1400_v30 }
 0x770   :  { %v1403_v6 = vpack.c.bf16 %v1401_v3, %v1401_v3 }
 0x771   :  { %v1405_v47 = vsel %vm725_vm6, %v1402_v27, 0 }
 0x772   :  { %1518 = vmatprep.subr.msk.bf16.mxu1 %vm725_vm6, %v1403_v6 }
 0x773   :  { %1411 = vmatpush1.bf16.msra.mxu1 %v1405_v47 }
 0x776   :  { %1519 = vmatmul.mubr.msk.bf16.vlgmr.msra.gmra.mrb[28].mxu1 %vm721_vm7, %v2068_v1 }
 0x849   :  { %v1444_v56 = vpop.f32.mrb[28].mxu1 }
 0x84a   :  { %v1445_v5 = vadd.f32 %v1444_v56, %v2092_v9  ;;  %v1446_v45 = vpop.f32.mrb[29].mxu1 }
 0x84b   :  { %v1447_v46 = vadd.f32 %v1446_v45, %v2092_v9  ;;  %v1448_v57 = vpop.f32.mrb[30].mxu1 }
 0x84c   :  { %v1449_v22 = vpop.f32.mrb[31].mxu1 }
 0x84d   :  { %v1453_v50 = vcombine.low %v1445_v5, %v1447_v46 }
 0x84f   :  { %1456 = vst [vmem:[#allocation2 + $0x8] sm:$0xff] %v1453_v50 }
 0x850   :  { %1720 = shalt.err (!%p1717_p4)
}
 0x851   :  { %s1721_s26 = scalar_lea.hbm %s2353_s6, 256 }
 0x852   :  { %p1722_p5 = scmp.ne.s32.totalorder %s2353_s6, %s1721_s26  ;;  %p1725_p6 = scmp.lt.u32.totalorder %s1721_s26, %s2353_s6 }
 0x854   :  { %p1727_p7 = pnand %p1725_p6, %p1722_p5 }
 0x856   :  { %1730 = shalt.err (!%p1727_p7)
}
 0x857   :  { %s1736_s7 = smov 128   ;;  %s1737_s8 = smov 8  }
 0x858   :  { %1468 = dma.vmem_to_hbm [thread:$0]  %s1463_s22, 256, %s2353_s6, [#allocation3], %s1736_s7, %s1736_s7, %s1737_s8  }
 0x859   :  { %1731 = dma.done.wait [#allocation3], 256  }
 0x85a   :  { %1732 = vsyncadd [#allocation3], 4294967040 }
 0x85b   :  { %1472 = vsyncpa [#allocation3], 1 }

</bundles_post_ra>
